<compile_context>
chip_gen: v6e
topology: v6e:2x2x1
jax: 0.10.0
libtpu: 0.0.40
codegen_flags: <defaults>
</compile_context>

<pallas_src>
import functools

import jax
import jax.numpy as jnp
from jax import lax
from jax.experimental import pallas as pl
from jax.experimental.pallas import tpu as pltpu


def _round_up(x, m):
    return ((x + m - 1) // m) * m


# ----------------------------------------------------------------------------
# Pallas kernel: one batch element per grid step, full ConvGRU cell update.
# Layout inside the kernel: channels on sublanes, flattened H*W on lanes.
# ----------------------------------------------------------------------------
def _convgru_kernel(x_ref, h_ref, w1_ref, w2_ref, b_ref, out_ref, buf_ref, *,
                    H, W, K, pad, off, cdt):
    HW = H * W
    Cx = x_ref.shape[1]
    Ch = h_ref.shape[1]
    Cin = Cx + Ch
    lbuf = buf_ref.shape[1]

    # ---- stage inputs into the lane-padded scratch ---------------------------
    # Zero the (128-aligned, full-sublane) halo blocks every step: cheap,
    # unmasked stores, and megacore/scratch-reuse safe.
    buf_ref[:, 0:off] = jnp.zeros((Cin, off), cdt)
    buf_ref[:, off + HW:lbuf] = jnp.zeros((Cin, lbuf - off - HW), cdt)
    # Direct sub-range stores -- no jnp.concatenate([x, h]) relayout.
    buf_ref[0:Cx, off:off + HW] = x_ref[0].astype(cdt)
    buf_ref[Cx:Cin, off:off + HW] = h_ref[0].astype(cdt)

    # ---- per-lane column masks for W-direction taps (row taps use the zero
    # halo blocks; only w-boundary wrap into neighboring rows must be masked).
    w_idx = lax.broadcasted_iota(jnp.int32, (1, HW), 1) % W
    col_ok = {ox: (w_idx + ox >= 0) & (w_idx + ox < W)
              for ox in range(-pad, pad + 1) if ox != 0}

    taps = [(ky, kx) for ky in range(K) for kx in range(K)]

    def slab(row0, row1, ky, kx):
        # shifted[:, h*W + w] = input[:, h + ky - pad, w + kx - pad] (0 if OOB)
        start = off + (ky - pad) * W + (kx - pad)
        s = buf_ref[row0:row1, start:start + HW]
        ox = kx - pad
        if ox != 0:
            s = jnp.where(col_ok[ox], s, jnp.zeros_like(s))
        return s

    # ---- gate pre-activations (transposed): reset / update over cat[x, h],
    # out-gate over x only (h columns of w1 are zeroed wrapper-side).
    gates = jnp.zeros((3 * Ch, HW), jnp.float32)
    for t, (ky, kx) in enumerate(taps):
        gates = gates + jnp.dot(w1_ref[t], slab(0, Cin, ky, kx),
                                preferred_element_type=jnp.float32)

    b = b_ref[...]                                         # (3*Ch, 1) f32
    r = jax.nn.sigmoid(gates[0:Ch] + b[0:Ch])              # (Ch, HW), lane-dense
    u = jax.nn.sigmoid(gates[Ch:2 * Ch] + b[Ch:2 * Ch])

    h_f = h_ref[0].astype(jnp.float32)                     # (Ch, HW)

    # ---- out gate: reuse the h-channel rows of the scratch for h*r -----------
    buf_ref[Cx:Cin, off:off + HW] = (h_f * r).astype(cdt)
    o_acc = gates[2 * Ch:3 * Ch]                           # x contribution
    for t, (ky, kx) in enumerate(taps):
        o_acc = o_acc + jnp.dot(w2_ref[t], slab(Cx, Cin, ky, kx),
                                preferred_element_type=jnp.float32)
    o = jnp.tanh(o_acc + b[2 * Ch:3 * Ch])

    new_h = h_f * (1.0 - u) + o * u
    out_ref[0] = new_h.astype(out_ref.dtype)               # (Ch, HW) lane-dense


# ----------------------------------------------------------------------------
# Wrapper: static weight fusion / transposition + pallas_call
# ----------------------------------------------------------------------------
def convgru_cell(x, h, params, *, compute_dtype=jnp.float32, donate_state=False):
    """x: (N, Cx, H, W) NCHW GRU input; h: (N, Ch, H, W) hidden state."""
    N, Cx, H, W = x.shape
    Ch = h.shape[1]
    HW = H * W

    w_r, w_u, w_o = params["w_reset"], params["w_update"], params["w_out"]
    Cout, Cin, KH, KW = w_r.shape                    # OIHW (PyTorch layout), static
    assert Cin == Cx + Ch, "weight in-channels must equal Cx + Ch"
    assert KH == KW and KH % 2 == 1, "kernel_size must be odd (PyTorch padding=k//2)"
    K = KH
    pad = K // 2

    # Fused per-tap weights, transposed for gatesT = W_tap @ shifted_input:
    #   rows [0:Ch)    reset   (full cat[x, h])
    #   rows [Ch:2Ch)  update  (full cat[x, h])
    #   rows [2Ch:3Ch) out     (x channels only; h columns zeroed -> handled by w2)
    w_o_x = w_o.at[:, Cx:, :, :].set(0.0)
    w1 = jnp.concatenate([w_r, w_u, w_o_x], axis=0)                      # (3Ch, Cin, K, K)
    w1 = w1.transpose(2, 3, 0, 1).reshape(K * K, 3 * Ch, Cin).astype(compute_dtype)
    w2 = w_o[:, Cx:, :, :].transpose(2, 3, 0, 1).reshape(K * K, Ch, Ch).astype(compute_dtype)
    b = jnp.concatenate([params["b_reset"], params["b_update"], params["b_out"]])
    b = b.reshape(3 * Ch, 1).astype(jnp.float32)

    # Free reshape (NCHW is contiguous): last dim H*W is lane-dense.
    x_f = x.reshape(N, Cx, HW)
    h_f = h.reshape(N, Ch, HW)

    off = _round_up(pad * (W + 1), 128)      # 128-aligned halo block on each side
    lbuf = off + HW + off

    kernel = functools.partial(_convgru_kernel, H=H, W=W, K=K, pad=pad,
                               off=off, cdt=compute_dtype)

    out = pl.pallas_call(
        kernel,
        out_shape=jax.ShapeDtypeStruct((N, Ch, HW), h.dtype),
        grid=(N,),
        in_specs=[
            pl.BlockSpec((1, Cx, HW), lambda n: (n, 0, 0)),
            pl.BlockSpec((1, Ch, HW), lambda n: (n, 0, 0)),
            pl.BlockSpec((K * K, 3 * Ch, Cin), lambda n: (0, 0, 0)),
            pl.BlockSpec((K * K, Ch, Ch), lambda n: (0, 0, 0)),
            pl.BlockSpec((3 * Ch, 1), lambda n: (0, 0)),
        ],
        out_specs=pl.BlockSpec((1, Ch, HW), lambda n: (n, 0, 0)),
        scratch_shapes=[pltpu.VMEM((Cin, lbuf), compute_dtype)],
        compiler_params=pltpu.CompilerParams(dimension_semantics=("parallel",)),
        # For recurrent rollouts with a donated hidden state, alias h -> output
        # to avoid an extra HBM allocation per timestep.
        input_output_aliases={1: 0} if donate_state else {},
    )(x_f, h_f, w1, w2, b)
    return out.reshape(N, Ch, H, W)


def decoder_forward(params, Elt, Rlt_top, Rlt_state):
    """Decoder.forward; all activations NCHW, matching the PyTorch module."""
    if Rlt_top is None:
        gru_in = Elt
    else:
        # F.upsample(scale_factor=2), default mode='nearest'.
        # TODO(synk): fuse the nearest upsample + channel concat into the kernel
        # (stage Rlt_top at half resolution straight into the scratch rows) to
        # drop this wrapper-side HBM pass; matters mostly on v5e.
        up = jnp.repeat(jnp.repeat(Rlt_top, 2, axis=2), 2, axis=3)
        gru_in = jnp.concatenate([Elt, up], axis=1)
    return convgru_cell(gru_in, Rlt_state, params)


# ----------------------------------------------------------------------------
# Pure-JAX reference (for correctness check)
# ----------------------------------------------------------------------------
def _conv_same_ref(x, w, b):
    pad = w.shape[-1] // 2
    y = lax.conv_general_dilated(
        x, w, window_strides=(1, 1), padding=[(pad, pad), (pad, pad)],
        dimension_numbers=("NCHW", "OIHW", "NCHW"))
    return y + b.reshape(1, -1, 1, 1)


def decoder_forward_ref(params, Elt, Rlt_top, Rlt_state):
    if Rlt_top is None:
        x = Elt
    else:
        up = jnp.repeat(jnp.repeat(Rlt_top, 2, axis=2), 2, axis=3)
        x = jnp.concatenate([Elt, up], axis=1)
    h = Rlt_state
    stacked = jnp.concatenate([x, h], axis=1)
    r = jax.nn.sigmoid(_conv_same_ref(stacked, params["w_reset"], params["b_reset"]))
    u = jax.nn.sigmoid(_conv_same_ref(stacked, params["w_update"], params["b_update"]))
    o = jnp.tanh(_conv_same_ref(jnp.concatenate([x, h * r], axis=1),
                                params["w_out"], params["b_out"]))
    return h * (1.0 - u) + o * u


# ----------------------------------------------------------------------------
# Deterministic parameter init (matches ConvGRUCell(Elt+Rlt_top, hidden, ksize))
# ----------------------------------------------------------------------------
def init_params(key, elt_size, rlt_top_size, hidden_size, kernel_size):
    cin = elt_size + rlt_top_size + hidden_size   # cat([x, h]) channels
    ks = jax.random.split(key, 6)
    scale = 0.1
    shape_w = (hidden_size, cin, kernel_size, kernel_size)   # OIHW
    return {
        "w_reset":  scale * jax.random.normal(ks[0], shape_w, jnp.float32),
        "w_update": scale * jax.random.normal(ks[1], shape_w, jnp.float32),
        "w_out":    scale * jax.random.normal(ks[2], shape_w, jnp.float32),
        "b_reset":  scale * jax.random.normal(ks[3], (hidden_size,), jnp.float32),
        "b_update": scale * jax.random.normal(ks[4], (hidden_size,), jnp.float32),
        "b_out":    scale * jax.random.normal(ks[5], (hidden_size,), jnp.float32),
    }


if __name__ == "__main__":
    # Small shapes consistent with the module (NCHW, like PyTorch).
    N = 2
    ELT_C = 4          # Elt_size
    RLT_TOP_C = 4      # Rlt_top_size
    HIDDEN = 8         # hidden_size
    KSIZE = 3          # kernel_size
    H = W = 16         # Elt spatial; Rlt_top comes from the layer above at H//2

    key = jax.random.PRNGKey(0)
    k_p, k_e, k_r, k_s = jax.random.split(key, 4)

    params = init_params(k_p, ELT_C, RLT_TOP_C, HIDDEN, KSIZE)

    Elt = jax.random.normal(k_e, (N, ELT_C, H, W), jnp.float32)
    Rlt_top = jax.random.normal(k_r, (N, RLT_TOP_C, H // 2, W // 2), jnp.float32)
    Rlt_state = jax.random.normal(k_s, (N, HIDDEN, H, W), jnp.float32)

    out = jax.jit(decoder_forward)(params, Elt, Rlt_top, Rlt_state)
    out = jax.block_until_ready(out)

    ref = jax.block_until_ready(decoder_forward_ref(params, Elt, Rlt_top, Rlt_state))
    assert out.shape == (N, HIDDEN, H, W)
    err = float(jnp.max(jnp.abs(out - ref)))
    assert jnp.allclose(out, ref, atol=2e-2, rtol=2e-2), \
        f"mismatch vs reference (max abs err {err})"

    print("KERNEL_OK")
</pallas_src>

<mosaic_0001>
module attributes {stable_mosaic.version = 11 : i64} {
  func.func @_convgru_kernel(%arg0: i32, %arg1: memref<1x8x256xf32, #tpu.memory_space<vmem>>, %arg2: memref<1x8x256xf32, #tpu.memory_space<vmem>>, %arg3: memref<9x24x16xf32, #tpu.memory_space<vmem>>, %arg4: memref<9x8x8xf32, #tpu.memory_space<vmem>>, %arg5: memref<24x1xf32, #tpu.memory_space<vmem>>, %arg6: memref<1x8x256xf32, #tpu.memory_space<vmem>>, %arg7: memref<16x512xf32, #tpu.memory_space<vmem>>) attributes {dimension_semantics = [#tpu.dimension_semantics<parallel>], iteration_bounds = array<i64: 2>, scalar_prefetch = 0 : i64, scratch_operands = 1 : i64, tpu.core_type = #tpu.core_type<tc>, window_params = [{transform_indices = @transform_0, window_bounds = array<i64: 1, 8, 256>}, {transform_indices = @transform_1, window_bounds = array<i64: 1, 8, 256>}, {pipeline_mode = #tpu.pipeline_mode<synchronous>, transform_indices = @transform_2, window_bounds = array<i64: 9, 24, 16>}, {pipeline_mode = #tpu.pipeline_mode<synchronous>, transform_indices = @transform_3, window_bounds = array<i64: 9, 8, 8>}, {pipeline_mode = #tpu.pipeline_mode<synchronous>, transform_indices = @transform_4, window_bounds = array<i64: 24, 1>}, {transform_indices = @transform_5, window_bounds = array<i64: 1, 8, 256>}]} {
    %cst = arith.constant 0.000000e+00 : f32
    %0 = vector.broadcast %cst : f32 to vector<16x128xf32>
    %c0 = arith.constant 0 : index
    %c0_0 = arith.constant 0 : index
    %1 = vector.load %arg7[%c0, %c0_0] : memref<16x512xf32, #tpu.memory_space<vmem>>, vector<16x128xf32>
    tpu.vector_store %arg7[%c0, %c0_0], %0 {strides = array<i32>} : memref<16x512xf32, #tpu.memory_space<vmem>>, vector<16x128xf32>,
    %cst_1 = arith.constant 0.000000e+00 : f32
    %2 = vector.broadcast %cst_1 : f32 to vector<16x128xf32>
    %c0_2 = arith.constant 0 : index
    %c384 = arith.constant 384 : index
    %3 = vector.load %arg7[%c0_2, %c384] : memref<16x512xf32, #tpu.memory_space<vmem>>, vector<16x128xf32>
    tpu.vector_store %arg7[%c0_2, %c384], %2 {strides = array<i32>} : memref<16x512xf32, #tpu.memory_space<vmem>>, vector<16x128xf32>,
    %c0_3 = arith.constant 0 : index
    %c0_4 = arith.constant 0 : index
    %c0_5 = arith.constant 0 : index
    %4 = vector.load %arg1[%c0_3, %c0_4, %c0_5] : memref<1x8x256xf32, #tpu.memory_space<vmem>>, vector<1x8x256xf32>
    %5 = vector.shape_cast %4 : vector<1x8x256xf32> to vector<8x256xf32>
    %c0_6 = arith.constant 0 : index
    %c128 = arith.constant 128 : index
    %6 = vector.load %arg7[%c0_6, %c128] : memref<16x512xf32, #tpu.memory_space<vmem>>, vector<8x256xf32>
    tpu.vector_store %arg7[%c0_6, %c128], %5 {strides = array<i32>} : memref<16x512xf32, #tpu.memory_space<vmem>>, vector<8x256xf32>,
    %c0_7 = arith.constant 0 : index
    %c0_8 = arith.constant 0 : index
    %c0_9 = arith.constant 0 : index
    %7 = vector.load %arg2[%c0_7, %c0_8, %c0_9] : memref<1x8x256xf32, #tpu.memory_space<vmem>>, vector<1x8x256xf32>
    %8 = vector.shape_cast %7 : vector<1x8x256xf32> to vector<8x256xf32>
    %c8 = arith.constant 8 : index
    %c128_10 = arith.constant 128 : index
    %9 = vector.load %arg7[%c8, %c128_10] : memref<16x512xf32, #tpu.memory_space<vmem>>, vector<8x256xf32>
    tpu.vector_store %arg7[%c8, %c128_10], %8 {strides = array<i32>} : memref<16x512xf32, #tpu.memory_space<vmem>>, vector<8x256xf32>,
    %10 = tpu.iota {dimensions = array<i32: 1>} : vector<1x256xi32>
    %c16_i32 = arith.constant 16 : i32
    %c0_i32 = arith.constant 0 : i32
    %11 = arith.cmpi eq, %c16_i32, %c0_i32 : i32
    %c1_i32 = arith.constant 1 : i32
    %12 = arith.select %11, %c1_i32, %c16_i32 : i32
    %13 = vector.broadcast %12 : i32 to vector<1x256xi32>
    %14 = arith.remsi %10, %13 : vector<1x256xi32>
    %c0_i32_11 = arith.constant 0 : i32
    %15 = vector.broadcast %c0_i32_11 : i32 to vector<1x256xi32>
    %16 = arith.cmpi ne, %14, %15 : vector<1x256xi32>
    %c0_i32_12 = arith.constant 0 : i32
    %17 = vector.broadcast %c0_i32_12 : i32 to vector<1x256xi32>
    %18 = arith.cmpi slt, %14, %17 : vector<1x256xi32>
    %c0_i32_13 = arith.constant 0 : i32
    %19 = arith.cmpi slt, %12, %c0_i32_13 : i32
    %20 = vector.broadcast %19 : i1 to vector<1x256xi1>
    %21 = vector.broadcast %20 : vector<1x256xi1> to vector<1x256xi1>
    %22 = arith.xori %18, %21 : vector<1x256xi1>
    %23 = arith.andi %22, %16 : vector<1x256xi1>
    %24 = vector.broadcast %12 : i32 to vector<1x256xi32>
    %25 = arith.addi %14, %24 : vector<1x256xi32>
    %26 = arith.select %23, %25, %14 : vector<1x256xi1>, vector<1x256xi32>
    %c-1_i32 = arith.constant -1 : i32
    %27 = vector.broadcast %c-1_i32 : i32 to vector<1x256xi32>
    %28 = arith.addi %26, %27 : vector<1x256xi32>
    %c0_i32_14 = arith.constant 0 : i32
    %29 = vector.broadcast %c0_i32_14 : i32 to vector<1x256xi32>
    %30 = arith.cmpi sge, %28, %29 : vector<1x256xi32>
    %c-1_i32_15 = arith.constant -1 : i32
    %31 = vector.broadcast %c-1_i32_15 : i32 to vector<1x256xi32>
    %32 = arith.addi %26, %31 : vector<1x256xi32>
    %c16_i32_16 = arith.constant 16 : i32
    %33 = vector.broadcast %c16_i32_16 : i32 to vector<1x256xi32>
    %34 = arith.cmpi slt, %32, %33 : vector<1x256xi32>
    %35 = arith.andi %30, %34 : vector<1x256xi1>
    %c1_i32_17 = arith.constant 1 : i32
    %36 = vector.broadcast %c1_i32_17 : i32 to vector<1x256xi32>
    %37 = arith.addi %26, %36 : vector<1x256xi32>
    %c0_i32_18 = arith.constant 0 : i32
    %38 = vector.broadcast %c0_i32_18 : i32 to vector<1x256xi32>
    %39 = arith.cmpi sge, %37, %38 : vector<1x256xi32>
    %c1_i32_19 = arith.constant 1 : i32
    %40 = vector.broadcast %c1_i32_19 : i32 to vector<1x256xi32>
    %41 = arith.addi %26, %40 : vector<1x256xi32>
    %c16_i32_20 = arith.constant 16 : i32
    %42 = vector.broadcast %c16_i32_20 : i32 to vector<1x256xi32>
    %43 = arith.cmpi slt, %41, %42 : vector<1x256xi32>
    %44 = arith.andi %39, %43 : vector<1x256xi1>
    %cst_21 = arith.constant 0.000000e+00 : f32
    %45 = vector.broadcast %cst_21 : f32 to vector<24x256xf32>
    %c0_22 = arith.constant 0 : index
    %c0_23 = arith.constant 0 : index
    %c0_24 = arith.constant 0 : index
    %46 = vector.load %arg3[%c0_22, %c0_23, %c0_24] : memref<9x24x16xf32, #tpu.memory_space<vmem>>, vector<1x24x16xf32>
    %47 = vector.shape_cast %46 : vector<1x24x16xf32> to vector<24x16xf32>
    %c0_25 = arith.constant 0 : index
    %c111 = arith.constant 111 : index
    %48 = vector.load %arg7[%c0_25, %c111] : memref<16x512xf32, #tpu.memory_space<vmem>>, vector<16x256xf32>
    %cst_26 = arith.constant 0.000000e+00 : f32
    %49 = vector.broadcast %cst_26 : f32 to vector<16x256xf32>
    %50 = vector.shape_cast %35 : vector<1x256xi1> to vector<1x256xi1>
    %51 = vector.broadcast %50 : vector<1x256xi1> to vector<16x256xi1>
    %52 = arith.select %51, %48, %49 : vector<16x256xi1>, vector<16x256xf32>
    %cst_27 = arith.constant dense<0.000000e+00> : vector<24x256xf32>
    %53 = tpu.matmul %47, %52, %cst_27 {dimension_numbers = #tpu.dot_dimension_numbers<[1], [0], [0], [1], [0, 0, 1, 1], [], []>} : vector<24x16xf32>, vector<16x256xf32>, vector<24x256xf32> -> vector<24x256xf32>
    %54 = arith.addf %45, %53 : vector<24x256xf32>
    %c1 = arith.constant 1 : index
    %c0_28 = arith.constant 0 : index
    %c0_29 = arith.constant 0 : index
    %55 = vector.load %arg3[%c1, %c0_28, %c0_29] : memref<9x24x16xf32, #tpu.memory_space<vmem>>, vector<1x24x16xf32>
    %56 = vector.shape_cast %55 : vector<1x24x16xf32> to vector<24x16xf32>
    %c0_30 = arith.constant 0 : index
    %c112 = arith.constant 112 : index
    %57 = vector.load %arg7[%c0_30, %c112] : memref<16x512xf32, #tpu.memory_space<vmem>>, vector<16x256xf32>
    %cst_31 = arith.constant dense<0.000000e+00> : vector<24x256xf32>
    %58 = tpu.matmul %56, %57, %cst_31 {dimension_numbers = #tpu.dot_dimension_numbers<[1], [0], [0], [1], [0, 0, 1, 1], [], []>} : vector<24x16xf32>, vector<16x256xf32>, vector<24x256xf32> -> vector<24x256xf32>
    %59 = arith.addf %54, %58 : vector<24x256xf32>
    %c2 = arith.constant 2 : index
    %c0_32 = arith.constant 0 : index
    %c0_33 = arith.constant 0 : index
    %60 = vector.load %arg3[%c2, %c0_32, %c0_33] : memref<9x24x16xf32, #tpu.memory_space<vmem>>, vector<1x24x16xf32>
    %61 = vector.shape_cast %60 : vector<1x24x16xf32> to vector<24x16xf32>
    %c0_34 = arith.constant 0 : index
    %c113 = arith.constant 113 : index
    %62 = vector.load %arg7[%c0_34, %c113] : memref<16x512xf32, #tpu.memory_space<vmem>>, vector<16x256xf32>
    %cst_35 = arith.constant 0.000000e+00 : f32
    %63 = vector.broadcast %cst_35 : f32 to vector<16x256xf32>
    %64 = vector.shape_cast %44 : vector<1x256xi1> to vector<1x256xi1>
    %65 = vector.broadcast %64 : vector<1x256xi1> to vector<16x256xi1>
    %66 = arith.select %65, %62, %63 : vector<16x256xi1>, vector<16x256xf32>
    %cst_36 = arith.constant dense<0.000000e+00> : vector<24x256xf32>
    %67 = tpu.matmul %61, %66, %cst_36 {dimension_numbers = #tpu.dot_dimension_numbers<[1], [0], [0], [1], [0, 0, 1, 1], [], []>} : vector<24x16xf32>, vector<16x256xf32>, vector<24x256xf32> -> vector<24x256xf32>
    %68 = arith.addf %59, %67 : vector<24x256xf32>
    %c3 = arith.constant 3 : index
    %c0_37 = arith.constant 0 : index
    %c0_38 = arith.constant 0 : index
    %69 = vector.load %arg3[%c3, %c0_37, %c0_38] : memref<9x24x16xf32, #tpu.memory_space<vmem>>, vector<1x24x16xf32>
    %70 = vector.shape_cast %69 : vector<1x24x16xf32> to vector<24x16xf32>
    %c0_39 = arith.constant 0 : index
    %c127 = arith.constant 127 : index
    %71 = vector.load %arg7[%c0_39, %c127] : memref<16x512xf32, #tpu.memory_space<vmem>>, vector<16x256xf32>
    %cst_40 = arith.constant 0.000000e+00 : f32
    %72 = vector.broadcast %cst_40 : f32 to vector<16x256xf32>
    %73 = vector.shape_cast %35 : vector<1x256xi1> to vector<1x256xi1>
    %74 = vector.broadcast %73 : vector<1x256xi1> to vector<16x256xi1>
    %75 = arith.select %74, %71, %72 : vector<16x256xi1>, vector<16x256xf32>
    %cst_41 = arith.constant dense<0.000000e+00> : vector<24x256xf32>
    %76 = tpu.matmul %70, %75, %cst_41 {dimension_numbers = #tpu.dot_dimension_numbers<[1], [0], [0], [1], [0, 0, 1, 1], [], []>} : vector<24x16xf32>, vector<16x256xf32>, vector<24x256xf32> -> vector<24x256xf32>
    %77 = arith.addf %68, %76 : vector<24x256xf32>
    %c4 = arith.constant 4 : index
    %c0_42 = arith.constant 0 : index
    %c0_43 = arith.constant 0 : index
    %78 = vector.load %arg3[%c4, %c0_42, %c0_43] : memref<9x24x16xf32, #tpu.memory_space<vmem>>, vector<1x24x16xf32>
    %79 = vector.shape_cast %78 : vector<1x24x16xf32> to vector<24x16xf32>
    %c0_44 = arith.constant 0 : index
    %c128_45 = arith.constant 128 : index
    %80 = vector.load %arg7[%c0_44, %c128_45] : memref<16x512xf32, #tpu.memory_space<vmem>>, vector<16x256xf32>
    %cst_46 = arith.constant dense<0.000000e+00> : vector<24x256xf32>
    %81 = tpu.matmul %79, %80, %cst_46 {dimension_numbers = #tpu.dot_dimension_numbers<[1], [0], [0], [1], [0, 0, 1, 1], [], []>} : vector<24x16xf32>, vector<16x256xf32>, vector<24x256xf32> -> vector<24x256xf32>
    %82 = arith.addf %77, %81 : vector<24x256xf32>
    %c5 = arith.constant 5 : index
    %c0_47 = arith.constant 0 : index
    %c0_48 = arith.constant 0 : index
    %83 = vector.load %arg3[%c5, %c0_47, %c0_48] : memref<9x24x16xf32, #tpu.memory_space<vmem>>, vector<1x24x16xf32>
    %84 = vector.shape_cast %83 : vector<1x24x16xf32> to vector<24x16xf32>
    %c0_49 = arith.constant 0 : index
    %c129 = arith.constant 129 : index
    %85 = vector.load %arg7[%c0_49, %c129] : memref<16x512xf32, #tpu.memory_space<vmem>>, vector<16x256xf32>
    %cst_50 = arith.constant 0.000000e+00 : f32
    %86 = vector.broadcast %cst_50 : f32 to vector<16x256xf32>
    %87 = vector.shape_cast %44 : vector<1x256xi1> to vector<1x256xi1>
    %88 = vector.broadcast %87 : vector<1x256xi1> to vector<16x256xi1>
    %89 = arith.select %88, %85, %86 : vector<16x256xi1>, vector<16x256xf32>
    %cst_51 = arith.constant dense<0.000000e+00> : vector<24x256xf32>
    %90 = tpu.matmul %84, %89, %cst_51 {dimension_numbers = #tpu.dot_dimension_numbers<[1], [0], [0], [1], [0, 0, 1, 1], [], []>} : vector<24x16xf32>, vector<16x256xf32>, vector<24x256xf32> -> vector<24x256xf32>
    %91 = arith.addf %82, %90 : vector<24x256xf32>
    %c6 = arith.constant 6 : index
    %c0_52 = arith.constant 0 : index
    %c0_53 = arith.constant 0 : index
    %92 = vector.load %arg3[%c6, %c0_52, %c0_53] : memref<9x24x16xf32, #tpu.memory_space<vmem>>, vector<1x24x16xf32>
    %93 = vector.shape_cast %92 : vector<1x24x16xf32> to vector<24x16xf32>
    %c0_54 = arith.constant 0 : index
    %c143 = arith.constant 143 : index
    %94 = vector.load %arg7[%c0_54, %c143] : memref<16x512xf32, #tpu.memory_space<vmem>>, vector<16x256xf32>
    %cst_55 = arith.constant 0.000000e+00 : f32
    %95 = vector.broadcast %cst_55 : f32 to vector<16x256xf32>
    %96 = vector.shape_cast %35 : vector<1x256xi1> to vector<1x256xi1>
    %97 = vector.broadcast %96 : vector<1x256xi1> to vector<16x256xi1>
    %98 = arith.select %97, %94, %95 : vector<16x256xi1>, vector<16x256xf32>
    %cst_56 = arith.constant dense<0.000000e+00> : vector<24x256xf32>
    %99 = tpu.matmul %93, %98, %cst_56 {dimension_numbers = #tpu.dot_dimension_numbers<[1], [0], [0], [1], [0, 0, 1, 1], [], []>} : vector<24x16xf32>, vector<16x256xf32>, vector<24x256xf32> -> vector<24x256xf32>
    %100 = arith.addf %91, %99 : vector<24x256xf32>
    %c7 = arith.constant 7 : index
    %c0_57 = arith.constant 0 : index
    %c0_58 = arith.constant 0 : index
    %101 = vector.load %arg3[%c7, %c0_57, %c0_58] : memref<9x24x16xf32, #tpu.memory_space<vmem>>, vector<1x24x16xf32>
    %102 = vector.shape_cast %101 : vector<1x24x16xf32> to vector<24x16xf32>
    %c0_59 = arith.constant 0 : index
    %c144 = arith.constant 144 : index
    %103 = vector.load %arg7[%c0_59, %c144] : memref<16x512xf32, #tpu.memory_space<vmem>>, vector<16x256xf32>
    %cst_60 = arith.constant dense<0.000000e+00> : vector<24x256xf32>
    %104 = tpu.matmul %102, %103, %cst_60 {dimension_numbers = #tpu.dot_dimension_numbers<[1], [0], [0], [1], [0, 0, 1, 1], [], []>} : vector<24x16xf32>, vector<16x256xf32>, vector<24x256xf32> -> vector<24x256xf32>
    %105 = arith.addf %100, %104 : vector<24x256xf32>
    %c8_61 = arith.constant 8 : index
    %c0_62 = arith.constant 0 : index
    %c0_63 = arith.constant 0 : index
    %106 = vector.load %arg3[%c8_61, %c0_62, %c0_63] : memref<9x24x16xf32, #tpu.memory_space<vmem>>, vector<1x24x16xf32>
    %107 = vector.shape_cast %106 : vector<1x24x16xf32> to vector<24x16xf32>
    %c0_64 = arith.constant 0 : index
    %c145 = arith.constant 145 : index
    %108 = vector.load %arg7[%c0_64, %c145] : memref<16x512xf32, #tpu.memory_space<vmem>>, vector<16x256xf32>
    %cst_65 = arith.constant 0.000000e+00 : f32
    %109 = vector.broadcast %cst_65 : f32 to vector<16x256xf32>
    %110 = vector.shape_cast %44 : vector<1x256xi1> to vector<1x256xi1>
    %111 = vector.broadcast %110 : vector<1x256xi1> to vector<16x256xi1>
    %112 = arith.select %111, %108, %109 : vector<16x256xi1>, vector<16x256xf32>
    %cst_66 = arith.constant dense<0.000000e+00> : vector<24x256xf32>
    %113 = tpu.matmul %107, %112, %cst_66 {dimension_numbers = #tpu.dot_dimension_numbers<[1], [0], [0], [1], [0, 0, 1, 1], [], []>} : vector<24x16xf32>, vector<16x256xf32>, vector<24x256xf32> -> vector<24x256xf32>
    %114 = arith.addf %105, %113 : vector<24x256xf32>
    %c0_67 = arith.constant 0 : index
    %c0_68 = arith.constant 0 : index
    %115 = vector.load %arg5[%c0_67, %c0_68] : memref<24x1xf32, #tpu.memory_space<vmem>>, vector<24x1xf32>
    %116 = vector.extract_strided_slice %114 {offsets = [0, 0], sizes = [8, 256], strides = [1, 1]} : vector<24x256xf32> to vector<8x256xf32>
    %117 = vector.extract_strided_slice %115 {offsets = [0, 0], sizes = [8, 1], strides = [1, 1]} : vector<24x1xf32> to vector<8x1xf32>
    %118 = vector.broadcast %117 : vector<8x1xf32> to vector<8x256xf32>
    %119 = arith.addf %116, %118 : vector<8x256xf32>
    %120 = arith.negf %119 : vector<8x256xf32>
    %121 = math.exp %120 : vector<8x256xf32>
    %cst_69 = arith.constant 1.000000e+00 : f32
    %122 = vector.broadcast %cst_69 : f32 to vector<8x256xf32>
    %123 = arith.addf %122, %121 : vector<8x256xf32>
    %124 = arith.divf %122, %123 : vector<8x256xf32>
    %125 = vector.extract_strided_slice %114 {offsets = [8, 0], sizes = [8, 256], strides = [1, 1]} : vector<24x256xf32> to vector<8x256xf32>
    %126 = vector.extract_strided_slice %115 {offsets = [8, 0], sizes = [8, 1], strides = [1, 1]} : vector<24x1xf32> to vector<8x1xf32>
    %127 = vector.broadcast %126 : vector<8x1xf32> to vector<8x256xf32>
    %128 = arith.addf %125, %127 : vector<8x256xf32>
    %129 = arith.negf %128 : vector<8x256xf32>
    %130 = math.exp %129 : vector<8x256xf32>
    %cst_70 = arith.constant 1.000000e+00 : f32
    %131 = vector.broadcast %cst_70 : f32 to vector<8x256xf32>
    %132 = arith.addf %131, %130 : vector<8x256xf32>
    %133 = arith.divf %131, %132 : vector<8x256xf32>
    %c0_71 = arith.constant 0 : index
    %c0_72 = arith.constant 0 : index
    %c0_73 = arith.constant 0 : index
    %134 = vector.load %arg2[%c0_71, %c0_72, %c0_73] : memref<1x8x256xf32, #tpu.memory_space<vmem>>, vector<1x8x256xf32>
    %135 = vector.shape_cast %134 : vector<1x8x256xf32> to vector<8x256xf32>
    %136 = arith.mulf %135, %124 : vector<8x256xf32>
    %c8_74 = arith.constant 8 : index
    %c128_75 = arith.constant 128 : index
    %137 = vector.load %arg7[%c8_74, %c128_75] : memref<16x512xf32, #tpu.memory_space<vmem>>, vector<8x256xf32>
    tpu.vector_store %arg7[%c8_74, %c128_75], %136 {strides = array<i32>} : memref<16x512xf32, #tpu.memory_space<vmem>>, vector<8x256xf32>,
    %138 = vector.extract_strided_slice %114 {offsets = [16, 0], sizes = [8, 256], strides = [1, 1]} : vector<24x256xf32> to vector<8x256xf32>
    %c0_76 = arith.constant 0 : index
    %c0_77 = arith.constant 0 : index
    %c0_78 = arith.constant 0 : index
    %139 = vector.load %arg4[%c0_76, %c0_77, %c0_78] : memref<9x8x8xf32, #tpu.memory_space<vmem>>, vector<1x8x8xf32>
    %140 = vector.shape_cast %139 : vector<1x8x8xf32> to vector<8x8xf32>
    %c8_79 = arith.constant 8 : index
    %c111_80 = arith.constant 111 : index
    %141 = vector.load %arg7[%c8_79, %c111_80] : memref<16x512xf32, #tpu.memory_space<vmem>>, vector<8x256xf32>
    %cst_81 = arith.constant 0.000000e+00 : f32
    %142 = vector.broadcast %cst_81 : f32 to vector<8x256xf32>
    %143 = vector.shape_cast %35 : vector<1x256xi1> to vector<1x256xi1>
    %144 = vector.broadcast %143 : vector<1x256xi1> to vector<8x256xi1>
    %145 = arith.select %144, %141, %142 : vector<8x256xi1>, vector<8x256xf32>
    %cst_82 = arith.constant dense<0.000000e+00> : vector<8x256xf32>
    %146 = tpu.matmul %140, %145, %cst_82 {dimension_numbers = #tpu.dot_dimension_numbers<[1], [0], [0], [1], [0, 0, 1, 1], [], []>} : vector<8x8xf32>, vector<8x256xf32>, vector<8x256xf32> -> vector<8x256xf32>
    %147 = arith.addf %138, %146 : vector<8x256xf32>
    %c1_83 = arith.constant 1 : index
    %c0_84 = arith.constant 0 : index
    %c0_85 = arith.constant 0 : index
    %148 = vector.load %arg4[%c1_83, %c0_84, %c0_85] : memref<9x8x8xf32, #tpu.memory_space<vmem>>, vector<1x8x8xf32>
    %149 = vector.shape_cast %148 : vector<1x8x8xf32> to vector<8x8xf32>
    %c8_86 = arith.constant 8 : index
    %c112_87 = arith.constant 112 : index
    %150 = vector.load %arg7[%c8_86, %c112_87] : memref<16x512xf32, #tpu.memory_space<vmem>>, vector<8x256xf32>
    %cst_88 = arith.constant dense<0.000000e+00> : vector<8x256xf32>
    %151 = tpu.matmul %149, %150, %cst_88 {dimension_numbers = #tpu.dot_dimension_numbers<[1], [0], [0], [1], [0, 0, 1, 1], [], []>} : vector<8x8xf32>, vector<8x256xf32>, vector<8x256xf32> -> vector<8x256xf32>
    %152 = arith.addf %147, %151 : vector<8x256xf32>
    %c2_89 = arith.constant 2 : index
    %c0_90 = arith.constant 0 : index
    %c0_91 = arith.constant 0 : index
    %153 = vector.load %arg4[%c2_89, %c0_90, %c0_91] : memref<9x8x8xf32, #tpu.memory_space<vmem>>, vector<1x8x8xf32>
    %154 = vector.shape_cast %153 : vector<1x8x8xf32> to vector<8x8xf32>
    %c8_92 = arith.constant 8 : index
    %c113_93 = arith.constant 113 : index
    %155 = vector.load %arg7[%c8_92, %c113_93] : memref<16x512xf32, #tpu.memory_space<vmem>>, vector<8x256xf32>
    %cst_94 = arith.constant 0.000000e+00 : f32
    %156 = vector.broadcast %cst_94 : f32 to vector<8x256xf32>
    %157 = vector.shape_cast %44 : vector<1x256xi1> to vector<1x256xi1>
    %158 = vector.broadcast %157 : vector<1x256xi1> to vector<8x256xi1>
    %159 = arith.select %158, %155, %156 : vector<8x256xi1>, vector<8x256xf32>
    %cst_95 = arith.constant dense<0.000000e+00> : vector<8x256xf32>
    %160 = tpu.matmul %154, %159, %cst_95 {dimension_numbers = #tpu.dot_dimension_numbers<[1], [0], [0], [1], [0, 0, 1, 1], [], []>} : vector<8x8xf32>, vector<8x256xf32>, vector<8x256xf32> -> vector<8x256xf32>
    %161 = arith.addf %152, %160 : vector<8x256xf32>
    %c3_96 = arith.constant 3 : index
    %c0_97 = arith.constant 0 : index
    %c0_98 = arith.constant 0 : index
    %162 = vector.load %arg4[%c3_96, %c0_97, %c0_98] : memref<9x8x8xf32, #tpu.memory_space<vmem>>, vector<1x8x8xf32>
    %163 = vector.shape_cast %162 : vector<1x8x8xf32> to vector<8x8xf32>
    %c8_99 = arith.constant 8 : index
    %c127_100 = arith.constant 127 : index
    %164 = vector.load %arg7[%c8_99, %c127_100] : memref<16x512xf32, #tpu.memory_space<vmem>>, vector<8x256xf32>
    %cst_101 = arith.constant 0.000000e+00 : f32
    %165 = vector.broadcast %cst_101 : f32 to vector<8x256xf32>
    %166 = vector.shape_cast %35 : vector<1x256xi1> to vector<1x256xi1>
    %167 = vector.broadcast %166 : vector<1x256xi1> to vector<8x256xi1>
    %168 = arith.select %167, %164, %165 : vector<8x256xi1>, vector<8x256xf32>
    %cst_102 = arith.constant dense<0.000000e+00> : vector<8x256xf32>
    %169 = tpu.matmul %163, %168, %cst_102 {dimension_numbers = #tpu.dot_dimension_numbers<[1], [0], [0], [1], [0, 0, 1, 1], [], []>} : vector<8x8xf32>, vector<8x256xf32>, vector<8x256xf32> -> vector<8x256xf32>
    %170 = arith.addf %161, %169 : vector<8x256xf32>
    %c4_103 = arith.constant 4 : index
    %c0_104 = arith.constant 0 : index
    %c0_105 = arith.constant 0 : index
    %171 = vector.load %arg4[%c4_103, %c0_104, %c0_105] : memref<9x8x8xf32, #tpu.memory_space<vmem>>, vector<1x8x8xf32>
    %172 = vector.shape_cast %171 : vector<1x8x8xf32> to vector<8x8xf32>
    %c8_106 = arith.constant 8 : index
    %c128_107 = arith.constant 128 : index
    %173 = vector.load %arg7[%c8_106, %c128_107] : memref<16x512xf32, #tpu.memory_space<vmem>>, vector<8x256xf32>
    %cst_108 = arith.constant dense<0.000000e+00> : vector<8x256xf32>
    %174 = tpu.matmul %172, %173, %cst_108 {dimension_numbers = #tpu.dot_dimension_numbers<[1], [0], [0], [1], [0, 0, 1, 1], [], []>} : vector<8x8xf32>, vector<8x256xf32>, vector<8x256xf32> -> vector<8x256xf32>
    %175 = arith.addf %170, %174 : vector<8x256xf32>
    %c5_109 = arith.constant 5 : index
    %c0_110 = arith.constant 0 : index
    %c0_111 = arith.constant 0 : index
    %176 = vector.load %arg4[%c5_109, %c0_110, %c0_111] : memref<9x8x8xf32, #tpu.memory_space<vmem>>, vector<1x8x8xf32>
    %177 = vector.shape_cast %176 : vector<1x8x8xf32> to vector<8x8xf32>
    %c8_112 = arith.constant 8 : index
    %c129_113 = arith.constant 129 : index
    %178 = vector.load %arg7[%c8_112, %c129_113] : memref<16x512xf32, #tpu.memory_space<vmem>>, vector<8x256xf32>
    %cst_114 = arith.constant 0.000000e+00 : f32
    %179 = vector.broadcast %cst_114 : f32 to vector<8x256xf32>
    %180 = vector.shape_cast %44 : vector<1x256xi1> to vector<1x256xi1>
    %181 = vector.broadcast %180 : vector<1x256xi1> to vector<8x256xi1>
    %182 = arith.select %181, %178, %179 : vector<8x256xi1>, vector<8x256xf32>
    %cst_115 = arith.constant dense<0.000000e+00> : vector<8x256xf32>
    %183 = tpu.matmul %177, %182, %cst_115 {dimension_numbers = #tpu.dot_dimension_numbers<[1], [0], [0], [1], [0, 0, 1, 1], [], []>} : vector<8x8xf32>, vector<8x256xf32>, vector<8x256xf32> -> vector<8x256xf32>
    %184 = arith.addf %175, %183 : vector<8x256xf32>
    %c6_116 = arith.constant 6 : index
    %c0_117 = arith.constant 0 : index
    %c0_118 = arith.constant 0 : index
    %185 = vector.load %arg4[%c6_116, %c0_117, %c0_118] : memref<9x8x8xf32, #tpu.memory_space<vmem>>, vector<1x8x8xf32>
    %186 = vector.shape_cast %185 : vector<1x8x8xf32> to vector<8x8xf32>
    %c8_119 = arith.constant 8 : index
    %c143_120 = arith.constant 143 : index
    %187 = vector.load %arg7[%c8_119, %c143_120] : memref<16x512xf32, #tpu.memory_space<vmem>>, vector<8x256xf32>
    %cst_121 = arith.constant 0.000000e+00 : f32
    %188 = vector.broadcast %cst_121 : f32 to vector<8x256xf32>
    %189 = vector.shape_cast %35 : vector<1x256xi1> to vector<1x256xi1>
    %190 = vector.broadcast %189 : vector<1x256xi1> to vector<8x256xi1>
    %191 = arith.select %190, %187, %188 : vector<8x256xi1>, vector<8x256xf32>
    %cst_122 = arith.constant dense<0.000000e+00> : vector<8x256xf32>
    %192 = tpu.matmul %186, %191, %cst_122 {dimension_numbers = #tpu.dot_dimension_numbers<[1], [0], [0], [1], [0, 0, 1, 1], [], []>} : vector<8x8xf32>, vector<8x256xf32>, vector<8x256xf32> -> vector<8x256xf32>
    %193 = arith.addf %184, %192 : vector<8x256xf32>
    %c7_123 = arith.constant 7 : index
    %c0_124 = arith.constant 0 : index
    %c0_125 = arith.constant 0 : index
    %194 = vector.load %arg4[%c7_123, %c0_124, %c0_125] : memref<9x8x8xf32, #tpu.memory_space<vmem>>, vector<1x8x8xf32>
    %195 = vector.shape_cast %194 : vector<1x8x8xf32> to vector<8x8xf32>
    %c8_126 = arith.constant 8 : index
    %c144_127 = arith.constant 144 : index
    %196 = vector.load %arg7[%c8_126, %c144_127] : memref<16x512xf32, #tpu.memory_space<vmem>>, vector<8x256xf32>
    %cst_128 = arith.constant dense<0.000000e+00> : vector<8x256xf32>
    %197 = tpu.matmul %195, %196, %cst_128 {dimension_numbers = #tpu.dot_dimension_numbers<[1], [0], [0], [1], [0, 0, 1, 1], [], []>} : vector<8x8xf32>, vector<8x256xf32>, vector<8x256xf32> -> vector<8x256xf32>
    %198 = arith.addf %193, %197 : vector<8x256xf32>
    %c8_129 = arith.constant 8 : index
    %c0_130 = arith.constant 0 : index
    %c0_131 = arith.constant 0 : index
    %199 = vector.load %arg4[%c8_129, %c0_130, %c0_131] : memref<9x8x8xf32, #tpu.memory_space<vmem>>, vector<1x8x8xf32>
    %200 = vector.shape_cast %199 : vector<1x8x8xf32> to vector<8x8xf32>
    %c8_132 = arith.constant 8 : index
    %c145_133 = arith.constant 145 : index
    %201 = vector.load %arg7[%c8_132, %c145_133] : memref<16x512xf32, #tpu.memory_space<vmem>>, vector<8x256xf32>
    %cst_134 = arith.constant 0.000000e+00 : f32
    %202 = vector.broadcast %cst_134 : f32 to vector<8x256xf32>
    %203 = vector.shape_cast %44 : vector<1x256xi1> to vector<1x256xi1>
    %204 = vector.broadcast %203 : vector<1x256xi1> to vector<8x256xi1>
    %205 = arith.select %204, %201, %202 : vector<8x256xi1>, vector<8x256xf32>
    %cst_135 = arith.constant dense<0.000000e+00> : vector<8x256xf32>
    %206 = tpu.matmul %200, %205, %cst_135 {dimension_numbers = #tpu.dot_dimension_numbers<[1], [0], [0], [1], [0, 0, 1, 1], [], []>} : vector<8x8xf32>, vector<8x256xf32>, vector<8x256xf32> -> vector<8x256xf32>
    %207 = arith.addf %198, %206 : vector<8x256xf32>
    %208 = vector.extract_strided_slice %115 {offsets = [16, 0], sizes = [8, 1], strides = [1, 1]} : vector<24x1xf32> to vector<8x1xf32>
    %209 = vector.broadcast %208 : vector<8x1xf32> to vector<8x256xf32>
    %210 = arith.addf %207, %209 : vector<8x256xf32>
    %211 = math.tanh %210 : vector<8x256xf32>
    %cst_136 = arith.constant 1.000000e+00 : f32
    %212 = vector.broadcast %cst_136 : f32 to vector<8x256xf32>
    %213 = arith.subf %212, %133 : vector<8x256xf32>
    %214 = arith.mulf %135, %213 : vector<8x256xf32>
    %215 = arith.mulf %211, %133 : vector<8x256xf32>
    %216 = arith.addf %214, %215 : vector<8x256xf32>
    %c0_137 = arith.constant 0 : index
    %c0_138 = arith.constant 0 : index
    %c0_139 = arith.constant 0 : index
    %217 = vector.load %arg6[%c0_137, %c0_138, %c0_139] : memref<1x8x256xf32, #tpu.memory_space<vmem>>, vector<1x8x256xf32>
    %218 = vector.shape_cast %217 : vector<1x8x256xf32> to vector<8x256xf32>
    %219 = vector.shape_cast %216 : vector<8x256xf32> to vector<1x8x256xf32>
    tpu.vector_store %arg6[%c0_137, %c0_138, %c0_139], %219 {strides = array<i32>} : memref<1x8x256xf32, #tpu.memory_space<vmem>>, vector<1x8x256xf32>,
    return
  }
  func.func @transform_0(%arg0: i32) -> (i32, i32, i32) {
    %c0_i32 = arith.constant 0 : i32
    %c0_i32_0 = arith.constant 0 : i32
    %c0_i32_1 = arith.constant 0 : i32
    return %arg0, %c0_i32, %c0_i32_0 : i32, i32, i32
  }
  func.func @transform_1(%arg0: i32) -> (i32, i32, i32) {
    %c0_i32 = arith.constant 0 : i32
    %c0_i32_0 = arith.constant 0 : i32
    %c0_i32_1 = arith.constant 0 : i32
    return %arg0, %c0_i32, %c0_i32_0 : i32, i32, i32
  }
  func.func @transform_2(%arg0: i32) -> (i32, i32, i32) {
    %c0_i32 = arith.constant 0 : i32
    %c0_i32_0 = arith.constant 0 : i32
    %c0_i32_1 = arith.constant 0 : i32
    %c0_i32_2 = arith.constant 0 : i32
    return %c0_i32, %c0_i32_0, %c0_i32_1 : i32, i32, i32
  }
  func.func @transform_3(%arg0: i32) -> (i32, i32, i32) {
    %c0_i32 = arith.constant 0 : i32
    %c0_i32_0 = arith.constant 0 : i32
    %c0_i32_1 = arith.constant 0 : i32
    %c0_i32_2 = arith.constant 0 : i32
    return %c0_i32, %c0_i32_0, %c0_i32_1 : i32, i32, i32
  }
  func.func @transform_4(%arg0: i32) -> (i32, i32) {
    %c0_i32 = arith.constant 0 : i32
    %c0_i32_0 = arith.constant 0 : i32
    %c0_i32_1 = arith.constant 0 : i32
    return %c0_i32, %c0_i32_0 : i32, i32
  }
  func.func @transform_5(%arg0: i32) -> (i32, i32, i32) {
    %c0_i32 = arith.constant 0 : i32
    %c0_i32_0 = arith.constant 0 : i32
    %c0_i32_1 = arith.constant 0 : i32
    return %arg0, %c0_i32, %c0_i32_0 : i32, i32, i32
  }
}

</mosaic_0001>

<bundles_post_ra>
// kernel: decoder_forward.1
= control target key start
LH: loop header
LB: loop body
LE: loop exit
PB: predicated region body
PF: predicated region fallthrough
CT: control target
= control target key end

     0   :  { %s2622_s18 = smov 0   ;;  %s3137_s0 = inlined_call_operand.vmem [shape: f32[2,8,256], index: 0, kind: input, shape index: {}]   ;;  %s3138_s1 = inlined_call_operand.vmem [shape: f32[2,8,256], index: 1, kind: input, shape index: {}]   ;;  %s3139_s2 = inlined_call_operand.vmem [shape: f32[9,24,16], index: 2, kind: input, shape index: {}]   ;;  %s3140_s3 = inlined_call_operand.vmem [shape: f32[9,8,8], index: 3, kind: input, shape index: {}]   ;;  %s3141_s4 = inlined_call_operand.vmem [shape: f32[24,1], index: 4, kind: input, shape index: {}]   ;;  %s3142_s5 = inlined_call_operand.vmem [shape: f32[2,8,256], index: 5, kind: output, shape index: {}]  }
   0x1 LB: > { %s2368_s19 = sadd.s32 4294967295, %s2580_s18   ;;  %p2372_p0 = scmp.ge.s32.totalorder %s2580_s18, 1  ;;  %s2580_s18 = sphi %s2622_s18, %s15_s18  }
   0x2   : > { %p197_p1 = scmp.lt.s32.totalorder %s2580_s18, 3 }
   0x4   : > { %p198_p2 = pnand %p2372_p0, %p197_p1 }
   0x5   : > { %p230_p3 = scmp.lt.s32.totalorder (!%p198_p2), %s2368_s19, 1  ;;  %s2583_s20 = smov (!%p198_p2), 16  }
   0x6   : > { %201 = sbr.rel (%p198_p2) target bundleno = 811 (0x32b), region = 40  ;;  %s2584_s28 = smov (!%p198_p2), 17  }
   0x7   : > { %s2585_s29 = smov (!%p198_p2), 15   ;;  %s2586_s30 = smov (!%p198_p2), 1  }
   0x8   : > { %s2587_s6 = smov (!%p198_p2), 127   ;;  %s2588_s7 = smov (!%p198_p2), 113  }
   0x9   : > { %s2589_s8 = smov (!%p198_p2), 112   ;;  %s2590_s9 = smov (!%p198_p2), 111  }
   0xb   : > { %v2582_v0 = vmov 0.0   ;;  %s3144_s19 = smov (!%p230_p3, %s2368_s19), 1  ;;  %v2591_v5 = vmov 0   ;;  %v1429_v6 = vld [vmem:[%s3141_s4] sm:$0xff]  ;;  %v257_v7 = vlaneseq  ;;  %vm360_vm0 = vcmask 130048   ;;  %v2379_v26 = vld [vmem:[%s3139_s2 + $0x18] sm:$0xff] }
   0xc   : > { %442 = vmatprep.mubr.f32.mxu0 %v2582_v0  ;;  %534 = vmatprep.mubr.f32.mxu1 %v2582_v0  ;;  %s2634_s21 = sshll.u32 %s3144_s19, 4  ;;  %vm331_vm2 = vcmask 138240   ;;  %v2380_v33 = vld [vmem:[%s3139_s2 + $0x20] sm:$0xff]  ;;  %v2381_v40 = vld [vmem:[%s3139_s2 + $0x28] sm:$0xff]  ;;  %vm573_vm4 = vcmask 121856   ;;  %v302_v50 = vld [vmem:[%s3139_s2 + $0x10] sm:$0xff] }
   0xd   : > { %2511 = vrot.lane.b32.xlu1 %v2582_v0, %s2583_s20  ;;  %s2640_s24 = scalar_lea.vmem %s3138_s1, %s2634_s21  ;;  %s234_s27 = scalar_lea.vmem %s3137_s0, %s2634_s21  ;;  %2550 = vset.pattern.permute.xlu0 %v2591_v5  ;;  %v258_v8 = vand.u32 127, %v257_v7  ;;  %v300_v41 = vld [vmem:[%s3139_s2] sm:$0xff]  ;;  %v301_v46 = vld [vmem:[%s3139_s2 + $0x8] sm:$0xff]  ;;  %v2392_v56 = vld [vmem:[%s3139_s2 + $0x30] sm:$0xff]  ;;  %vm700_vm7 = vcmask 7168   ;;  %vm941_vm8 = vcmask 1039360  }
   0xe   : > { %v2647_v1 = vld [vmem:[%s2640_s24] sm:$0xff]  ;;  %v2656_v3 = vld [vmem:[%s2640_s24 + $0x8] sm:$0xff]  ;;  %2551 = vset.pattern.permute.xlu1 %v2591_v5  ;;  %v2393_v63 = vld [vmem:[%s3139_s2 + $0x38] sm:$0xff]  ;;  %vm1068_vm9 = vcmask 924672   ;;  %vm1195_vm10 = vcmask 916480   ;;  %vm1318_vm11 = vcmask 908288  }
   0xf   : > { %v2649_v2 = vld [vmem:[%s234_s27] sm:$0xff]  ;;  %356 = vrot.lane.b32.xlu0 %v2647_v1, %s2583_s20  ;;  %v2662_v4 = vld [vmem:[%s234_s27 + $0x8] sm:$0xff]  ;;  %v259_v10 = vadd.s32 128, %v258_v8  ;;  %v264_v17 = vand.u32 15, %v258_v8  ;;  %vm1495_vm12 = vcmask 64512  }
  0x11   : > { %350 = vrot.lane.b32.xlu1 %v2649_v2, %s2583_s20  ;;  %v271_v14 = vand.u32 15, %v259_v10  ;;  %v2753_v24 = vadd.s32 4294967295, %v264_v17  ;;  %v2793_v45 = vadd.s32 1, %v264_v17 }
  0x13   : > { %358 = vrot.lane.b32.xlu0 %v2656_v3, %s2583_s20  ;;  %v2751_v21 = vadd.s32 4294967295, %v271_v14  ;;  %vm286_vm3 = vcmp.ge.s32.totalorder %v2753_v24, 0  ;;  %v2773_v35 = vadd.s32 1, %v271_v14  ;;  %vm296_vm6 = vcmp.lt.s32.totalorder %v2793_v45, 16  ;;  %v2412_v14 = vld [vmem:[%s3139_s2 + $0x60] sm:$0xff] }
  0x15   : > { %327 = vrot.lane.b32.xlu1 %v2647_v1, %s2584_s28  ;;  %vm287_vm1 = vcmp.ge.s32.totalorder %v2751_v21, 0  ;;  %vm297_vm5 = vcmp.lt.s32.totalorder %v2773_v35, 16  ;;  %v2483_v21 = vld [vmem:[%s3140_s3 + $0x40] sm:$0xff] }
  0x17   : > { %352 = vrot.lane.b32.xlu0 %v2662_v4, %s2583_s20 }
  0x19   : > { %2516 = vrot.lane.b32.xlu1 %v2582_v0, %s2584_s28 }
  0x1b   : > { %329 = vrot.lane.b32.xlu0 %v2656_v3, %s2584_s28 }
  0x1d   : > { %323 = vrot.lane.b32.xlu1 %v2662_v4, %s2584_s28 }
  0x1f   : > { %321 = vrot.lane.b32.xlu0 %v2649_v2, %s2584_s28 }
  0x21   : > { %571 = vrot.lane.b32.xlu1 %v2656_v3, %s2585_s29 }
  0x23   : > { %569 = vrot.lane.b32.xlu0 %v2647_v1, %s2585_s29 }
  0x25   : > { %563 = vrot.lane.b32.xlu1 %v2649_v2, %s2585_s29 }
  0x27   : > { %2521 = vrot.lane.b32.xlu0 %v2582_v0, %s2585_s29 }
  0x29   : > { %696 = vrot.lane.b32.xlu1 %v2647_v1, %s2586_s30 }
  0x2b   : > { %565 = vrot.lane.b32.xlu0 %v2662_v4, %s2585_s29 }
  0x2d   : > { %2526 = vrot.lane.b32.xlu1 %v2582_v0, %s2586_s30 }
  0x2f   : > { %698 = vrot.lane.b32.xlu0 %v2656_v3, %s2586_s30 }
  0x31   : > { %692 = vrot.lane.b32.xlu1 %v2662_v4, %s2586_s30 }
  0x33   : > { %690 = vrot.lane.b32.xlu0 %v2649_v2, %s2586_s30 }
  0x35   : > { %2531 = vrot.lane.b32.xlu1 %v2582_v0, %s2587_s6 }
  0x37   : > { %937 = vrot.lane.b32.xlu0 %v2656_v3, %s2587_s6 }
  0x39   : > { %931 = vrot.lane.b32.xlu1 %v2662_v4, %s2587_s6 }
  0x3b   : > { %935 = vrot.lane.b32.xlu0 %v2647_v1, %s2587_s6 }
  0x3d   : > { %2536 = vrot.lane.b32.xlu1 %v2582_v0, %s2588_s7 }
  0x3f   : > { %1064 = vrot.lane.b32.xlu0 %v2656_v3, %s2588_s7 }
  0x41   : > { %1062 = vrot.lane.b32.xlu1 %v2647_v1, %s2588_s7 }
  0x43   : > { %929 = vrot.lane.b32.xlu0 %v2649_v2, %s2587_s6 }
  0x45   : > { %1056 = vrot.lane.b32.xlu1 %v2649_v2, %s2588_s7 }
  0x47   : > { %1058 = vrot.lane.b32.xlu0 %v2662_v4, %s2588_s7 }
  0x49   : > { %2541 = vrot.lane.b32.xlu1 %v2582_v0, %s2589_s8 }
  0x4b   : > { %1191 = vrot.lane.b32.xlu0 %v2656_v3, %s2589_s8 }
  0x4d   : > { %1185 = vrot.lane.b32.xlu1 %v2662_v4, %s2589_s8 }
  0x4f   : > { %1189 = vrot.lane.b32.xlu0 %v2647_v1, %s2589_s8 }
  0x51   : > { %2546 = vrot.lane.b32.xlu1 %v2582_v0, %s2590_s9 }
  0x53   : > { %1314 = vrot.lane.b32.xlu0 %v2656_v3, %s2590_s9 }
  0x55   : > { %1312 = vrot.lane.b32.xlu1 %v2647_v1, %s2590_s9 }
  0x57   : > { %1183 = vrot.lane.b32.xlu0 %v2649_v2, %s2589_s8 }
  0x59   : > { %1306 = vrot.lane.b32.xlu1 %v2649_v2, %s2590_s9 }
  0x5b   : > { %1308 = vrot.lane.b32.xlu0 %v2662_v4, %s2590_s9 }
  0x5d   : > { %1574 = vrot.lane.b32.xlu1 %v2582_v0, %s2583_s20 }
  0x5f   : > { %1434 = vperm.xlu0 %2550, %v1429_v6  }
  0x61   : > { %1752 = vrot.lane.b32.xlu1 %v2582_v0, %s2586_s30 }
  0x63   : > { %1483 = vrot.lane.b32.xlu0 %v2582_v0, %s2584_s28 }
  0x65   : > { %1930 = vrot.lane.b32.xlu1 %v2582_v0, %s2587_s6 }
  0x67   : > { %1662 = vrot.lane.b32.xlu0 %v2582_v0, %s2585_s29 }
  0x6b   : > { %2020 = vrot.lane.b32.xlu0 %v2582_v0, %s2588_s7 }
  0x7f   : > { %v2512_v9 = vpop.permute.xlu1 %2511 }
  0x80   : > { %v2513_v13 = vunpack.i.l.bf16 %v2512_v9  ;;  %v2514_v19 = vunpack.i.h.bf16 %v2512_v9 }
  0x81   : > { %v357_v11 = vpop.permute.xlu0 %356 }
  0x82   : > { %v363_v20 = vsel %vm360_vm0, %v2513_v13, %v357_v11 }
  0x83   : > { %v351_v12 = vpop.permute.xlu1 %350 }
  0x84   : > { %v361_v28 = vsel %vm360_vm0, %v2514_v19, %v351_v12 }
  0x85   : > { %v359_v15 = vpop.permute.xlu0 %358 }
  0x86   : > { %v364_v18 = vsel %vm360_vm0, %v357_v11, %v359_v15  ;;  %v2402_v11 = vld [vmem:[%s3139_s2 + $0x48] sm:$0xff]  ;;  %v2403_v15 = vld [vmem:[%s3139_s2 + $0x50] sm:$0xff] }
  0x87   : > { %v328_v16 = vpop.permute.xlu1 %327  ;;  %406 = vmatprep.subr.mxu0 %v364_v18 }
  0x88   : > { %407 = vmatpush1.msra.mxu0 %v363_v20 }
  0x89   : > { %v353_v22 = vpop.permute.xlu0 %352 }
  0x8a   : > { %v362_v25 = vsel %vm360_vm0, %v351_v12, %v353_v22  ;;  %v2413_v22 = vld [vmem:[%s3139_s2 + $0x68] sm:$0xff] }
  0x8b   : > { %v2517_v23 = vpop.permute.xlu1 %2516  ;;  %408 = vmatprep.subr.mxu0 %v362_v25 }
  0x8c   : > { %v2518_v27 = vunpack.i.l.bf16 %v2517_v23  ;;  %409 = vmatpush1.msra.mxu0 %v361_v28  ;;  %v2519_v31 = vunpack.i.h.bf16 %v2517_v23  ;;  %v2404_v23 = vld [vmem:[%s3139_s2 + $0x58] sm:$0xff] }
  0x8d   : > { %v330_v29 = vpop.permute.xlu0 %329  ;;  %2382 = vmatmul.mubr.msk.f32.vlgmr.msra.gmra.mxu0 %vm360_vm0, %v2379_v26 }
  0x8e   : > { %v335_v32 = vsel %vm331_vm2, %v328_v16, %v330_v29  ;;  %448 = vmatprep.mubr.f32.mxu0 %v2582_v0  ;;  %v334_v34 = vsel %vm331_vm2, %v2518_v27, %v328_v16 }
  0x8f   : > { %v324_v30 = vpop.permute.xlu1 %323  ;;  %2385 = vmatprep.subr.msk.mxu1 %vm287_vm1, %v335_v32 }
  0x90   : > { %2386 = vmatpush1.msk.msra.mxu1 %vm286_vm3, %v334_v34 }
  0x91   : > { %v322_v36 = vpop.permute.xlu0 %321  ;;  %2383 = vmatmul.mubr.msk.f32.gmra.mxu0 %vm360_vm0, %v2380_v33  ;;  %v2418_v33 = vld [vmem:[%s3139_s2 + $0x78] sm:$0xff] }
  0x92   : > { %v332_v38 = vsel %vm331_vm2, %v2519_v31, %v322_v36  ;;  %v333_v39 = vsel %vm331_vm2, %v322_v36, %v324_v30  ;;  %454 = vmatprep.mubr.f32.mxu0 %v2582_v0  ;;  %v2414_v30 = vld [vmem:[%s3139_s2 + $0x70] sm:$0xff] }
  0x93   : > { %v572_v37 = vpop.permute.xlu1 %571  ;;  %2387 = vmatprep.subr.msk.mxu1 %vm287_vm1, %v333_v39  ;;  %v2419_v39 = vld [vmem:[%s3139_s2 + $0x80] sm:$0xff] }
  0x94   : > { %2388 = vmatpush1.msk.msra.mxu1 %vm286_vm3, %v332_v38 }
  0x95   : > { %v570_v42 = vpop.permute.xlu0 %569  ;;  %2384 = vmatmul.mubr.msk.f32.gmra.mxu0 %vm360_vm0, %v2381_v40  ;;  %2389 = vmatmul.mubr.msk.f32.vlgmr.msra.gmra.mxu1 %vm360_vm0, %v300_v41 }
  0x96   : > { %v577_v44 = vsel %vm573_vm4, %v570_v42, %v572_v37  ;;  %540 = vmatprep.mubr.f32.mxu1 %v2582_v0  ;;  %659 = vmatprep.mubr.f32.mxu0 %v2582_v0 }
  0x97   : > { %v564_v43 = vpop.permute.xlu1 %563  ;;  %2395 = vmatprep.subr.msk.mxu0 %vm297_vm5, %v577_v44 }
  0x99   : > { %v2522_v47 = vpop.permute.xlu0 %2521  ;;  %2390 = vmatmul.mubr.msk.f32.gmra.mxu1 %vm360_vm0, %v301_v46 }
  0x9a   : > { %v2523_v49 = vunpack.i.l.bf16 %v2522_v47  ;;  %546 = vmatprep.mubr.f32.mxu1 %v2582_v0  ;;  %v2524_v51 = vunpack.i.h.bf16 %v2522_v47  ;;  %v2420_v47 = vld [vmem:[%s3139_s2 + $0x88] sm:$0xff] }
  0x9b   : > { %v697_v48 = vpop.permute.xlu1 %696 }
  0x9c   : > { %v576_v52 = vsel %vm573_vm4, %v2523_v49, %v570_v42  ;;  %v574_v58 = vsel %vm573_vm4, %v2524_v51, %v564_v43  ;;  %v2429_v49 = vld [vmem:[%s3139_s2 + $0x98] sm:$0xff] }
  0x9d   : > { %v566_v53 = vpop.permute.xlu0 %565  ;;  %2396 = vmatpush1.msk.msra.mxu0 %vm296_vm6, %v576_v52  ;;  %2391 = vmatmul.mubr.msk.f32.gmra.mxu1 %vm360_vm0, %v302_v50 }
  0x9e   : > { %v575_v55 = vsel %vm573_vm4, %v564_v43, %v566_v53  ;;  %786 = vmatprep.mubr.f32.mxu1 %v2582_v0  ;;  %v2428_v43 = vld [vmem:[%s3139_s2 + $0x90] sm:$0xff] }
  0x9f   : > { %v2527_v54 = vpop.permute.xlu1 %2526  ;;  %2397 = vmatprep.subr.msk.mxu0 %vm297_vm5, %v575_v55  ;;  %v2430_v55 = vld [vmem:[%s3139_s2 + $0xa0] sm:$0xff] }
  0xa0   : > { %v2528_v57 = vunpack.i.l.bf16 %v2527_v54  ;;  %2398 = vmatpush1.msk.msra.mxu0 %vm296_vm6, %v574_v58  ;;  %v2529_v61 = vunpack.i.h.bf16 %v2527_v54 }
  0xa1   : > { %v699_v59 = vpop.permute.xlu0 %698  ;;  %2399 = vmatmul.mubr.msk.f32.vlgmr.msra.gmra.mxu0 %vm360_vm0, %v2392_v56  ;;  %852 = vmatprep.subr.mxu0 %v2656_v3 }
  0xa2   : > { %v704_v62 = vsel %vm700_vm7, %v697_v48, %v699_v59  ;;  %665 = vmatprep.mubr.f32.mxu0 %v2582_v0  ;;  %853 = vmatpush1.msra.mxu0 %v2647_v1  ;;  %v703_v5 = vsel %vm700_vm7, %v2528_v57, %v697_v48 }
  0xa3   : > { %v693_v60 = vpop.permute.xlu1 %692  ;;  %2405 = vmatprep.subr.msk.mxu1 %vm287_vm1, %v704_v62  ;;  %854 = vmatprep.subr.mxu0 %v2662_v4  ;;  %v2394_v4 = vld [vmem:[%s3139_s2 + $0x40] sm:$0xff]  ;;  %v2438_v62 = vld [vmem:[%s3139_s2 + $0xa8] sm:$0xff] }
  0xa4   : > { %2406 = vmatpush1.msk.msra.mxu1 %vm286_vm3, %v703_v5  ;;  %855 = vmatpush1.msra.mxu0 %v2649_v2 }
  0xa5   : > { %v691_v6 = vpop.permute.xlu0 %690  ;;  %2400 = vmatmul.mubr.msk.f32.gmra.mxu0 %vm360_vm0, %v2393_v63 }
  0xa6   : > { %v701_v8 = vsel %vm700_vm7, %v2529_v61, %v691_v6  ;;  %v702_v9 = vsel %vm700_vm7, %v691_v6, %v693_v60  ;;  %671 = vmatprep.mubr.f32.mxu0 %v2582_v0 }
  0xa7   : > { %v2532_v7 = vpop.permute.xlu1 %2531  ;;  %2407 = vmatprep.subr.msk.mxu1 %vm287_vm1, %v702_v9 }
  0xa8   : > { %v2533_v10 = vunpack.i.l.bf16 %v2532_v7  ;;  %2408 = vmatpush1.msk.msra.mxu1 %vm286_vm3, %v701_v8  ;;  %v2534_v16 = vunpack.i.h.bf16 %v2532_v7  ;;  %v2439_v8 = vld [vmem:[%s3139_s2 + $0xb0] sm:$0xff] }
  0xa9   : > { %v938_v2 = vpop.permute.xlu0 %937  ;;  %2401 = vmatmul.mubr.msk.f32.gmra.mxu0 %vm360_vm0, %v2394_v4  ;;  %2409 = vmatmul.mubr.msk.f32.vlgmr.msra.gmra.mxu1 %vm360_vm0, %v2402_v11  ;;  %v2444_v4 = vld [vmem:[%s3139_s2 + $0xc0] sm:$0xff]  ;;  %v2440_v11 = vld [vmem:[%s3139_s2 + $0xb8] sm:$0xff] }
  0xaa   : > { %v945_v13 = vsel %vm941_vm8, %v938_v2, %v2533_v10  ;;  %792 = vmatprep.mubr.f32.mxu1 %v2582_v0  ;;  %888 = vmatprep.mubr.f32.mxu0 %v2582_v0 }
  0xab   : > { %v932_v12 = vpop.permute.xlu1 %931  ;;  %2421 = vmatprep.subr.msk.mxu1 %vm297_vm5, %v945_v13 }
  0xac   : > { %v943_v25 = vsel %vm941_vm8, %v932_v12, %v2534_v16 }
  0xad   : > { %v936_v17 = vpop.permute.xlu0 %935  ;;  %2415 = vmatmul.mubr.msk.f32.vlgmr.msra.gmra.mxu0 %vm360_vm0, %v2412_v14  ;;  %2410 = vmatmul.mubr.msk.f32.gmra.mxu1 %vm360_vm0, %v2403_v15 }
  0xae   : > { %v944_v19 = vsel %vm941_vm8, %v936_v17, %v938_v2  ;;  %798 = vmatprep.mubr.f32.mxu1 %v2582_v0  ;;  %894 = vmatprep.mubr.f32.mxu0 %v2582_v0  ;;  %v2445_v2 = vld [vmem:[%s3139_s2 + $0xc8] sm:$0xff] }
  0xaf   : > { %v2537_v18 = vpop.permute.xlu1 %2536  ;;  %2422 = vmatpush1.msk.msra.mxu1 %vm296_vm6, %v944_v19 }
  0xb0   : > { %v2538_v20 = vunpack.i.l.bf16 %v2537_v18  ;;  %2423 = vmatprep.subr.msk.mxu1 %vm297_vm5, %v943_v25  ;;  %v2539_v36 = vunpack.i.h.bf16 %v2537_v18 }
  0xb1   : > { %v1065_v26 = vpop.permute.xlu0 %1064  ;;  %2416 = vmatmul.mubr.msk.f32.gmra.mxu0 %vm360_vm0, %v2413_v22  ;;  %2411 = vmatmul.mubr.msk.f32.gmra.mxu1 %vm360_vm0, %v2404_v23 }
  0xb2   : > { %v1072_v28 = vsel %vm1068_vm9, %v1065_v26, %v2538_v20  ;;  %900 = vmatprep.mubr.f32.mxu0 %v2582_v0  ;;  %1027 = vmatprep.mubr.f32.mxu1 %v2582_v0 }
  0xb3   : > { %v1063_v27 = vpop.permute.xlu1 %1062  ;;  %2431 = vmatprep.subr.msk.mxu0 %vm287_vm1, %v1072_v28 }
  0xb4   : > { %v1071_v29 = vsel %vm1068_vm9, %v1063_v27, %v1065_v26 }
  0xb5   : > { %2432 = vmatpush1.msk.msra.mxu0 %vm286_vm3, %v1071_v29  ;;  %v930_v31 = vpop.permute.xlu0 %929 }
  0xb6   : > { %2417 = vmatmul.mubr.msk.f32.gmra.mxu0 %vm360_vm0, %v2414_v30  ;;  %v942_v34 = vsel %vm941_vm8, %v930_v31, %v932_v12  ;;  %v2446_v12 = vld [vmem:[%s3139_s2 + $0xd0] sm:$0xff] }
  0xb7   : > { %v1057_v32 = vpop.permute.xlu1 %1056  ;;  %1154 = vmatprep.mubr.f32.mxu0 %v2582_v0  ;;  %2424 = vmatpush1.msk.msra.mxu1 %vm296_vm6, %v942_v34 }
  0xb8   : > { %2425 = vmatmul.mubr.msk.f32.vlgmr.msra.gmra.mxu1 %vm360_vm0, %v2418_v33 }
  0xb9   : > { %v1059_v37 = vpop.permute.xlu0 %1058  ;;  %1033 = vmatprep.mubr.f32.mxu1 %v2582_v0 }
  0xba   : > { %v1069_v40 = vsel %vm1068_vm9, %v1057_v32, %v1059_v37  ;;  %v1070_v41 = vsel %vm1068_vm9, %v1059_v37, %v2539_v36 }
  0xbb   : > { %v2542_v38 = vpop.permute.xlu1 %2541  ;;  %2433 = vmatprep.subr.msk.mxu0 %vm287_vm1, %v1070_v41 }
  0xbc   : > { %v2543_v42 = vunpack.i.l.bf16 %v2542_v38  ;;  %2426 = vmatmul.mubr.msk.f32.gmra.mxu1 %vm360_vm0, %v2419_v39  ;;  %2434 = vmatpush1.msk.msra.mxu0 %vm286_vm3, %v1069_v40  ;;  %v2544_v50 = vunpack.i.h.bf16 %v2542_v38 }
  0xbd   : > { %v1192_v44 = vpop.permute.xlu0 %1191  ;;  %2435 = vmatmul.mubr.msk.f32.vlgmr.msra.gmra.mxu0 %vm360_vm0, %v2428_v43  ;;  %1039 = vmatprep.mubr.f32.mxu1 %v2582_v0 }
  0xbe   : > { %v1199_v48 = vsel %vm1195_vm10, %v1192_v44, %v2543_v42  ;;  %1160 = vmatprep.mubr.f32.mxu0 %v2582_v0 }
  0xbf   : > { %v1186_v46 = vpop.permute.xlu1 %1185  ;;  %1241 = vmatprep.subr.mxu1 %v1199_v48 }
  0xc0   : > { %2427 = vmatmul.mubr.msk.f32.gmra.mxu1 %vm360_vm0, %v2420_v47  ;;  %v1197_v56 = vsel %vm1195_vm10, %v1186_v46, %v2544_v50 }
  0xc1   : > { %v1190_v51 = vpop.permute.xlu0 %1189  ;;  %2436 = vmatmul.mubr.msk.f32.gmra.mxu0 %vm360_vm0, %v2429_v49  ;;  %1277 = vmatprep.mubr.f32.mxu1 %v2582_v0 }
  0xc2   : > { %v1198_v53 = vsel %vm1195_vm10, %v1190_v51, %v1192_v44  ;;  %1166 = vmatprep.mubr.f32.mxu0 %v2582_v0 }
  0xc3   : > { %v2547_v52 = vpop.permute.xlu1 %2546  ;;  %1242 = vmatpush1.msra.mxu1 %v1198_v53 }
  0xc4   : > { %v2548_v54 = vunpack.i.l.bf16 %v2547_v52  ;;  %1243 = vmatprep.subr.mxu1 %v1197_v56  ;;  %v2549_v6 = vunpack.i.h.bf16 %v2547_v52 }
  0xc5   : > { %v1315_v57 = vpop.permute.xlu0 %1314  ;;  %2437 = vmatmul.mubr.msk.f32.gmra.mxu0 %vm360_vm0, %v2430_v55 }
  0xc6   : > { %v1322_v59 = vsel %vm1318_vm11, %v1315_v57, %v2548_v54  ;;  %1404 = vmatprep.mubr.f32.mxu0 %v2582_v0 }
  0xc7   : > { %v1313_v58 = vpop.permute.xlu1 %1312  ;;  %2447 = vmatprep.subr.msk.mxu0 %vm297_vm5, %v1322_v59 }
  0xc8   : > { %v1321_v60 = vsel %vm1318_vm11, %v1313_v58, %v1315_v57 }
  0xc9   : > { %2448 = vmatpush1.msk.msra.mxu0 %vm296_vm6, %v1321_v60  ;;  %v1184_v61 = vpop.permute.xlu0 %1183 }
  0xca   : > { %v1196_v63 = vsel %vm1195_vm10, %v1184_v61, %v1186_v46 }
  0xcb   : > { %1244 = vmatpush1.msra.mxu1 %v1196_v63  ;;  %v1307_v5 = vpop.permute.xlu1 %1306 }
  0xcc   : > { %2441 = vmatmul.mubr.msk.f32.vlgmr.msra.gmra.mxu1 %vm360_vm0, %v2438_v62 }
  0xcd   : > { %v1309_v7 = vpop.permute.xlu0 %1308  ;;  %1283 = vmatprep.mubr.f32.mxu1 %v2582_v0 }
  0xce   : > { %v1320_v9 = vsel %vm1318_vm11, %v1309_v7, %v2549_v6  ;;  %v1319_v10 = vsel %vm1318_vm11, %v1307_v5, %v1309_v7 }
  0xcf   : > { %2449 = vmatprep.subr.msk.mxu0 %vm297_vm5, %v1320_v9 }
  0xd0   : > { %2442 = vmatmul.mubr.msk.f32.gmra.mxu1 %vm360_vm0, %v2439_v8  ;;  %2450 = vmatpush1.msk.msra.mxu0 %vm296_vm6, %v1319_v10 }
  0xd1   : > { %2451 = vmatmul.mubr.msk.f32.vlgmr.msra.gmra.mxu0 %vm360_vm0, %v2444_v4  ;;  %1289 = vmatprep.mubr.f32.mxu1 %v2582_v0 }
  0xd2   : > { %1410 = vmatprep.mubr.f32.mxu0 %v2582_v0 }
  0xd4   : > { %2443 = vmatmul.mubr.msk.f32.gmra.mxu1 %vm360_vm0, %v2440_v11 }
  0xd5   : > { %2452 = vmatmul.mubr.msk.f32.gmra.mxu0 %vm360_vm0, %v2445_v2  ;;  %1563 = vmatprep.mubr.f32.mxu1 %v2582_v0 }
  0xd6   : > { %1416 = vmatprep.mubr.f32.mxu0 %v2582_v0 }
  0xd9   : > { %2453 = vmatmul.mubr.msk.f32.gmra.mxu0 %vm360_vm0, %v2446_v12 }
  0xda   : > { %1831 = vmatprep.mubr.f32.mxu0 %v2582_v0 }
 0x14d   : > { %v444_v13 = vpop.f32.mrf.mxu0 }
 0x14f   : > { %v446_v14 = vpop.f32.mrf.mxu0 }
 0x151   : > { %v450_v15 = vpop.f32.mrf.mxu0 }
 0x153   : > { %v452_v16 = vpop.f32.mrf.mxu0 }
 0x155   : > { %v536_v17 = vpop.f32.mrf.mxu1  ;;  %v456_v19 = vpop.f32.mrf.mxu0 }
 0x157   : > { %v538_v18 = vpop.f32.mrf.mxu1  ;;  %v458_v26 = vpop.f32.mrf.mxu0 }
 0x159   : > { %v542_v20 = vpop.f32.mrf.mxu1 }
 0x15a   : > { %v543_v22 = vadd.f32 %v542_v20, %v450_v15  ;;  %v537_v15 = vadd.f32 %v536_v17, %v444_v13 }
 0x15b   : > { %v544_v23 = vpop.f32.mrf.mxu1 }
 0x15c   : > { %v545_v25 = vadd.f32 %v544_v23, %v452_v16  ;;  %v539_v23 = vadd.f32 %v538_v18, %v446_v14 }
 0x15d   : > { %v548_v27 = vpop.f32.mrf.mxu1 }
 0x15e   : > { %v549_v28 = vadd.f32 %v548_v27, %v456_v19 }
 0x15f   : > { %v550_v29 = vpop.f32.mrf.mxu1 }
 0x160   : > { %v551_v30 = vadd.f32 %v550_v29, %v458_v26 }
 0x161   : > { %v661_v31 = vpop.f32.mrf.mxu0 }
 0x162   : > { %v678_v27 = vadd.f32 %v661_v31, %v537_v15  ;;  %v1476_v15 = vld [vmem:[%s3140_s3] sm:$0xff] }
 0x163   : > { %v663_v32 = vpop.f32.mrf.mxu0 }
 0x165   : > { %v667_v33 = vpop.f32.mrf.mxu0 }
 0x166   : > { %v680_v34 = vadd.f32 %v667_v33, %v543_v22 }
 0x167   : > { %v669_v36 = vpop.f32.mrf.mxu0 }
 0x168   : > { %v681_v37 = vadd.f32 %v669_v36, %v545_v25 }
 0x169   : > { %v673_v38 = vpop.f32.mrf.mxu0  ;;  %v788_v39 = vpop.f32.mrf.mxu1 }
 0x16a   : > { %v682_v40 = vadd.f32 %v673_v38, %v549_v28  ;;  %v805_v33 = vadd.f32 %v788_v39, %v678_v27 }
 0x16b   : > { %v675_v41 = vpop.f32.mrf.mxu0  ;;  %v790_v42 = vpop.f32.mrf.mxu1 }
 0x16c   : > { %v683_v43 = vadd.f32 %v675_v41, %v551_v30  ;;  %v679_v30 = vadd.f32 %v663_v32, %v539_v23 }
 0x16d   : > { %v794_v44 = vpop.f32.mrf.mxu1  ;;  %v890_v46 = vpop.f32.mrf.mxu0 }
 0x16e   : > { %v807_v47 = vadd.f32 %v794_v44, %v680_v34  ;;  %v806_v36 = vadd.f32 %v790_v42, %v679_v30  ;;  %v2467_v30 = vld [vmem:[%s3140_s3 + $0x18] sm:$0xff] }
 0x16f   : > { %v796_v48 = vpop.f32.mrf.mxu1  ;;  %v892_v49 = vpop.f32.mrf.mxu0 }
 0x170   : > { %v808_v50 = vadd.f32 %v796_v48, %v681_v37  ;;  %v907_v37 = vadd.f32 %v890_v46, %v805_v33  ;;  %v908_v13 = vadd.f32 %v892_v49, %v806_v36 }
 0x171   : > { %v800_v51 = vpop.f32.mrf.mxu1  ;;  %v896_v52 = vpop.f32.mrf.mxu0 }
 0x172   : > { %v809_v53 = vadd.f32 %v800_v51, %v682_v40  ;;  %v909_v54 = vadd.f32 %v896_v52, %v807_v47  ;;  %v1435_v47 = vpop.permute.xlu0 %1434 }
 0x173   : > { %v802_v55 = vpop.f32.mrf.mxu1  ;;  %v898_v56 = vpop.f32.mrf.mxu0 }
 0x174   : > { %v810_v57 = vadd.f32 %v802_v55, %v683_v43  ;;  %v910_v58 = vadd.f32 %v898_v56, %v808_v50 }
 0x176   : > { %v902_v59 = vpop.f32.mrf.mxu0 }
 0x177   : > { %v911_v60 = vadd.f32 %v902_v59, %v809_v53  ;;  %v1484_v59 = vpop.permute.xlu0 %1483 }
 0x178   : > { %v904_v61 = vpop.f32.mrf.mxu0  ;;  %v1029_v63 = vpop.f32.mrf.mxu1 }
 0x179   : > { %v912_v62 = vadd.f32 %v904_v61, %v810_v57  ;;  %v1046_v17 = vadd.f32 %v1029_v63, %v907_v37 }
 0x17a   : > { %v1031_v5 = vpop.f32.mrf.mxu1 }
 0x17b   : > { %v1047_v40 = vadd.f32 %v1031_v5, %v908_v13  ;;  %v1663_v61 = vpop.permute.xlu0 %1662 }
 0x17c   : > { %v1035_v6 = vpop.f32.mrf.mxu1 }
 0x17d   : > { %v1048_v7 = vadd.f32 %v1035_v6, %v909_v54  ;;  %v1156_v8 = vpop.f32.mrf.mxu0 }
 0x17e   : > { %v1037_v9 = vpop.f32.mrf.mxu1  ;;  %v1173_v41 = vadd.f32 %v1156_v8, %v1046_v17 }
 0x17f   : > { %v1049_v10 = vadd.f32 %v1037_v9, %v910_v58  ;;  %v1158_v4 = vpop.f32.mrf.mxu0  ;;  %v3036_v63 = vpop.permute.xlu0 %2020 }
 0x180   : > { %v1041_v11 = vpop.f32.mrf.mxu1  ;;  %v1174_v14 = vadd.f32 %v1158_v4, %v1047_v40  ;;  %v2463_v40 = vld [vmem:[%s3140_s3 + $0x10] sm:$0xff] }
 0x181   : > { %v1050_v2 = vadd.f32 %v1041_v11, %v911_v60  ;;  %v1162_v12 = vpop.f32.mrf.mxu0  ;;  %v1575_v60 = vpop.permute.xlu1 %1574 }
 0x182   : > { %v2980_v16 = vadd.f32 %v1162_v12, %v1048_v7  ;;  %v1043_v19 = vpop.f32.mrf.mxu1 }
 0x183   : > { %v1051_v20 = vadd.f32 %v1043_v19, %v912_v62  ;;  %v1164_v22 = vpop.f32.mrf.mxu0 }
 0x184   : > { %v2982_v25 = vadd.f32 %v1164_v22, %v1049_v10 }
 0x185   : > { %v1168_v26 = vpop.f32.mrf.mxu0  ;;  %v1753_v62 = vpop.permute.xlu1 %1752 }
 0x186   : > { %v2984_v28 = vadd.f32 %v1168_v26, %v1050_v2 }
 0x187   : > { %v1170_v29 = vpop.f32.mrf.mxu0 }
 0x188   : > { %v2986_v34 = vadd.f32 %v1170_v29, %v1051_v20  ;;  %v2461_v29 = vld [vmem:[%s3140_s3 + $0x8] sm:$0xff] }
 0x189   : > { %v1931_v5 = vpop.permute.xlu1 %1930 }
 0x18c   : > { %v1279_v38 = vpop.f32.mrf.mxu1 }
 0x18d   : > { %v1296_v18 = vadd.f32 %v1279_v38, %v1173_v41 }
 0x18e   : > { %v1281_v43 = vpop.f32.mrf.mxu1 }
 0x18f   : > { %v1297_v31 = vadd.f32 %v1281_v43, %v1174_v14  ;;  %v2473_v43 = vld [vmem:[%s3140_s3 + $0x28] sm:$0xff] }
 0x190   : > { %v1285_v24 = vpop.f32.mrf.mxu1 }
 0x191   : > { %v1406_v44 = vpop.f32.mrf.mxu0 }
 0x192   : > { %v1423_v48 = vadd.f32 %v1406_v44, %v1296_v18 }
 0x193   : > { %v1408_v50 = vpop.f32.mrf.mxu0 }
 0x194   : > { %v1437_v51 = vadd.f32 %v1435_v47, %v1423_v48  ;;  %v1424_v32 = vadd.f32 %v1408_v50, %v1297_v31  ;;  %v2471_v31 = vld [vmem:[%s3140_s3 + $0x20] sm:$0xff]  ;;  %v2481_v48 = vld [vmem:[%s3140_s3 + $0x38] sm:$0xff] }
 0x196   : > { %v2454_v39 = vmul.f32 -1.442695, %v1437_v51  ;;  %v1438_v52 = vadd.f32 %v1435_v47, %v1424_v32 }
 0x198   : > { %2552 = vpow2.f32 %v2454_v39  ;;  %v2455_v42 = vmul.f32 -1.442695, %v1438_v52  ;;  %v2477_v39 = vld [vmem:[%s3140_s3 + $0x30] sm:$0xff] }
 0x19a   : > { %2554 = vpow2.f32 %v2455_v42 }
 0x1a5   : > { %v2553_v46 = vpop.eup %2552 }
 0x1a6   : > { %v1445_v49 = vadd.f32 1.0, %v2553_v46 }
 0x1a7   : > { %v2555_v53 = vpop.eup %2554 }
 0x1a8   : > { %2556 = vrcp.f32 %v1445_v49  ;;  %v1446_v54 = vadd.f32 1.0, %v2555_v53 }
 0x1aa   : > { %2558 = vrcp.f32 %v1446_v54  ;;  %v1412_v54 = vpop.f32.mrf.mxu0 }
 0x1b5   : > { %v2557_v55 = vpop.eup %2556 }
 0x1b6   : > { %v2989_v56 = vmul.f32 %v2557_v55, %v2647_v1  ;;  %v1430_v1 = vld [vmem:[%s3141_s4 + $0x8] sm:$0xff]  ;;  %v1287_v55 = vpop.f32.mrf.mxu1 }
 0x1b7   : > { %v2559_v57 = vpop.eup %2558 }
 0x1b8   : > { %1664 = vrot.lane.b32.xlu0 %v2989_v56, %s2585_s29  ;;  %1485 = vrot.lane.b32.xlu1 %v2989_v56, %s2584_s28  ;;  %v3000_v58 = vmul.f32 %v2559_v57, %v2656_v3  ;;  %v1431_v3 = vld [vmem:[%s3141_s4 + $0x10] sm:$0xff]  ;;  %v1299_v57 = vadd.f32 %v1287_v55, %v2982_v25 }
 0x1bc   : > { %1926 = vrot.lane.b32.xlu0 %v2989_v56, %s2587_s6  ;;  %1576 = vrot.lane.b32.xlu1 %v2989_v56, %s2583_s20 }
 0x1c0   : > { %1578 = vrot.lane.b32.xlu0 %v3000_v58, %s2583_s20  ;;  %1754 = vrot.lane.b32.xlu1 %v2989_v56, %s2586_s30 }
 0x1c4   : > { %2106 = vrot.lane.b32.xlu0 %v2989_v56, %s2589_s8  ;;  %1487 = vrot.lane.b32.xlu1 %v3000_v58, %s2584_s28 }
 0x1c8   : > { %1756 = vrot.lane.b32.xlu0 %v3000_v58, %s2586_s30  ;;  %2016 = vrot.lane.b32.xlu1 %v2989_v56, %s2588_s7 }
 0x1cc   : > { %1928 = vrot.lane.b32.xlu0 %v3000_v58, %s2587_s6  ;;  %1666 = vrot.lane.b32.xlu1 %v3000_v58, %s2585_s29  ;;  %s244_s29 = scalar_lea.vmem %s3142_s5, %s2634_s21 }
 0x1d0   : > { %2108 = vrot.lane.b32.xlu0 %v3000_v58, %s2589_s8  ;;  %2110 = vrot.lane.b32.xlu1 %v2582_v0, %s2589_s8 }
 0x1d4   : > { %2198 = vrot.lane.b32.xlu0 %v2582_v0, %s2590_s9  ;;  %2018 = vrot.lane.b32.xlu1 %v3000_v58, %s2588_s7 }
 0x1d8   : > { %1453 = vperm.xlu0 %2550, %v1430_v1   ;;  %2196 = vrot.lane.b32.xlu1 %v3000_v58, %s2590_s9  ;;  %v1291_v1 = vpop.f32.mrf.mxu1 }
 0x1dc   : > { %2194 = vrot.lane.b32.xlu1 %v2989_v56, %s2590_s9 }
 0x1e0   : > { %2284 = vperm.xlu1 %2551, %v1431_v3  }
 0x22a   : > { %v1665_v6 = vpop.permute.xlu0 %1664  ;;  %v1486_v7 = vpop.permute.xlu1 %1485 }
 0x22b   : > { %v1489_v19 = vsel %vm331_vm2, %v1484_v59, %v1486_v7  ;;  %v1668_v41 = vsel %vm573_vm4, %v1663_v61, %v1665_v6  ;;  %v1293_v61 = vpop.f32.mrf.mxu1 }
 0x22e   : > { %v1927_v8 = vpop.permute.xlu0 %1926  ;;  %v1577_v9 = vpop.permute.xlu1 %1576 }
 0x22f   : > { %v1580_v22 = vsel %vm360_vm0, %v1575_v60, %v1577_v9 }
 0x232   : > { %v1579_v10 = vpop.permute.xlu0 %1578  ;;  %v1755_v4 = vpop.permute.xlu1 %1754 }
 0x233   : > { %v1581_v20 = vsel %vm360_vm0, %v1577_v9, %v1579_v10  ;;  %v1758_v33 = vsel %vm700_vm7, %v1753_v62, %v1755_v4 }
 0x236   : > { %v2107_v11 = vpop.permute.xlu0 %2106  ;;  %v1488_v2 = vpop.permute.xlu1 %1487 }
 0x237   : > { %v1490_v12 = vsel %vm331_vm2, %v1486_v7, %v1488_v2 }
 0x238   : > { %2458 = vmatprep.subr.msk.mxu1 %vm287_vm1, %v1490_v12 }
 0x239   : > { %2459 = vmatpush1.msk.msra.mxu1 %vm286_vm3, %v1489_v19 }
 0x23a   : > { %v1757_v23 = vpop.permute.xlu0 %1756  ;;  %2460 = vmatmul.mubr.msk.f32.vlgmr.msra.gmra.mxu1 %vm1495_vm12, %v1476_v15  ;;  %1617 = vmatprep.subr.mxu1 %v1581_v20  ;;  %v2017_v26 = vpop.permute.xlu1 %2016 }
 0x23b   : > { %v1759_v27 = vsel %vm700_vm7, %v1755_v4, %v1757_v23  ;;  %1618 = vmatpush1.msra.mxu1 %v1580_v22  ;;  %1651 = vmatprep.mubr.f32.mxu1 %v2582_v0 }
 0x23c   : > { %2468 = vmatprep.subr.msk.mxu0 %vm287_vm1, %v1759_v27 }
 0x23d   : > { %2469 = vmatpush1.msk.msra.mxu0 %vm286_vm3, %v1758_v33 }
 0x23e   : > { %v1929_v36 = vpop.permute.xlu0 %1928  ;;  %2462 = vmatmul.mubr.msk.f32.vlgmr.msra.gmra.mxu1 %vm1495_vm12, %v2461_v29  ;;  %v1667_v37 = vpop.permute.xlu1 %1666  ;;  %2470 = vmatmul.mubr.msk.f32.vlgmr.msra.gmra.mxu0 %vm1495_vm12, %v2467_v30 }
 0x23f   : > { %v1932_v13 = vsel %vm941_vm8, %v1927_v8, %v1929_v36  ;;  %v1933_v17 = vsel %vm941_vm8, %v1929_v36, %v1931_v5  ;;  %v1669_v38 = vsel %vm573_vm4, %v1665_v6, %v1667_v37  ;;  %1741 = vmatprep.mubr.f32.mxu1 %v2582_v0  ;;  %2005 = vmatprep.mubr.f32.mxu0 %v2582_v0 }
 0x240   : > { %2464 = vmatprep.subr.msk.mxu1 %vm297_vm5, %v1669_v38  ;;  %2474 = vmatprep.subr.msk.mxu0 %vm297_vm5, %v1933_v17  ;;  %v1300_v6 = vadd.f32 %v1291_v1, %v2984_v28 }
 0x241   : > { %2465 = vmatpush1.msk.msra.mxu1 %vm296_vm6, %v1668_v41  ;;  %2475 = vmatpush1.msk.msra.mxu0 %vm296_vm6, %v1932_v13 }
 0x242   : > { %v2109_v14 = vpop.permute.xlu0 %2108  ;;  %2466 = vmatmul.mubr.msk.f32.vlgmr.msra.gmra.mxu1 %vm1495_vm12, %v2463_v40  ;;  %1875 = vmatprep.subr.mxu1 %v3000_v58  ;;  %v2111_v18 = vpop.permute.xlu1 %2110 }
 0x243   : > { %v2112_v44 = vsel %vm1195_vm10, %v2107_v11, %v2109_v14  ;;  %1876 = vmatpush1.msra.mxu1 %v2989_v56  ;;  %v2113_v47 = vsel %vm1195_vm10, %v2109_v14, %v2111_v18  ;;  %1909 = vmatprep.mubr.f32.mxu1 %v2582_v0  ;;  %v1414_v56 = vpop.f32.mrf.mxu0 }
 0x244   : > { %2149 = vmatprep.subr.mxu0 %v2113_v47  ;;  %2476 = vmatmul.mubr.msk.f32.vlgmr.msra.gmra.mxu0 %vm1495_vm12, %v2473_v43  ;;  %v1426_v3 = vadd.f32 %v1414_v56, %v1299_v57 }
 0x245   : > { %2150 = vmatpush1.msra.mxu0 %v2112_v44  ;;  %2183 = vmatprep.mubr.f32.mxu0 %v2582_v0  ;;  %v1418_v62 = vpop.f32.mrf.mxu0 }
 0x246   : > { %2472 = vmatmul.mubr.msk.f32.vlgmr.msra.gmra.mxu1 %vm1495_vm12, %v2471_v31  ;;  %v2019_v50 = vpop.permute.xlu1 %2018  ;;  %v2199_v52 = vpop.permute.xlu0 %2198  ;;  %v1427_v9 = vadd.f32 %v1418_v62, %v1300_v6 }
 0x247   : > { %v2022_v51 = vsel %vm1068_vm9, %v2017_v26, %v2019_v50  ;;  %v2023_v32 = vsel %vm1068_vm9, %v2019_v50, %v3036_v63  ;;  %2095 = vmatprep.mubr.f32.mxu1 %v2582_v0  ;;  %v1420_v7 = vpop.f32.mrf.mxu0 }
 0x248   : > { %2478 = vmatprep.subr.msk.mxu1 %vm287_vm1, %v2023_v32  ;;  %2482 = vmatmul.mubr.msk.f32.vlgmr.msra.gmra.mxu0 %vm1495_vm12, %v2481_v48 }
 0x249   : > { %2479 = vmatpush1.msk.msra.mxu1 %vm286_vm3, %v2022_v51 }
 0x24a   : > { %2480 = vmatmul.mubr.msk.f32.vlgmr.msra.gmra.mxu1 %vm1495_vm12, %v2477_v39  ;;  %v2197_v42 = vpop.permute.xlu1 %2196 }
 0x24b   : > { %v2201_v46 = vsel %vm1318_vm11, %v2197_v42, %v2199_v52  ;;  %2273 = vmatprep.mubr.f32.mxu1 %v2582_v0  ;;  %v1298_v0 = vadd.f32 %v1285_v24, %v2980_v16  ;;  %v1301_v16 = vadd.f32 %v1293_v61, %v2986_v34 }
 0x24c   : > { %2484 = vmatprep.subr.msk.mxu1 %vm297_vm5, %v2201_v46 }
 0x24d   : > { %v1425_v58 = vadd.f32 %v1412_v54, %v1298_v0  ;;  %v1428_v4 = vadd.f32 %v1420_v7, %v1301_v16 }
 0x24e   : > { %v2195_v49 = vpop.permute.xlu1 %2194 }
 0x24f   : > { %v2200_v53 = vsel %vm1318_vm11, %v2195_v49, %v2197_v42 }
 0x250   : > { %2485 = vmatpush1.msk.msra.mxu1 %vm296_vm6, %v2200_v53 }
 0x251   : > { %2486 = vmatmul.mubr.msk.f32.vlgmr.msra.gmra.mxu1 %vm1495_vm12, %v2483_v21 }
 0x253   : > { %v1454_v35 = vpop.permute.xlu0 %1453 }
 0x254   : > { %v1456_v59 = vadd.f32 %v1454_v35, %v1425_v58  ;;  %v1457_v60 = vadd.f32 %v1454_v35, %v1426_v3  ;;  %v2572_v35 = vld [vmem:[%s2640_s24] sm:$0xff]  ;;  %v2573_v3 = vld [vmem:[%s2640_s24 + $0x8] sm:$0xff] }
 0x256   : > { %v2456_v45 = vmul.f32 -1.442695, %v1456_v59  ;;  %v2457_v63 = vmul.f32 -1.442695, %v1457_v60 }
 0x258   : > { %2560 = vpow2.f32 %v2456_v45 }
 0x259   : > { %2562 = vpow2.f32 %v2457_v63 }
 0x25b   : > { %v2285_v39 = vpop.permute.xlu1 %2284 }
 0x265   : > { %v2561_v13 = vpop.eup %2560 }
 0x266   : > { %v2563_v41 = vpop.eup %2562  ;;  %v1464_v18 = vadd.f32 1.0, %v2561_v13 }
 0x267   : > { %v1465_v31 = vadd.f32 1.0, %v2563_v41 }
 0x268   : > { %2564 = vrcp.f32 %v1464_v18 }
 0x269   : > { %2566 = vrcp.f32 %v1465_v31 }
 0x275   : > { %v2565_v24 = vpop.eup %2564 }
 0x276   : > { %v2567_v54 = vpop.eup %2566  ;;  %v2291_v55 = vsub.f32 1.0, %v2565_v24 }
 0x277   : > { %v2292_v0 = vsub.f32 1.0, %v2567_v54 }
 0x278   : > { %v2293_v57 = vmul.f32 %v2572_v35, %v2291_v55 }
 0x279   : > { %v2294_v59 = vmul.f32 %v2573_v3, %v2292_v0 }
 0x2fa   : > { %v1565_v5 = vpop.f32.mrf.mxu1 }
 0x2fb   : > { %v1570_v11 = vadd.f32 %v1565_v5, %v1427_v9 }
 0x2fc   : > { %v1567_v8 = vpop.f32.mrf.mxu1 }
 0x2fd   : > { %v1571_v15 = vadd.f32 %v1567_v8, %v1428_v4 }
 0x2fe   : > { %v1653_v25 = vpop.f32.mrf.mxu1  ;;  %v1833_v10 = vpop.f32.mrf.mxu0 }
 0x2ff   : > { %v1658_v19 = vadd.f32 %v1653_v25, %v1570_v11 }
 0x300   : > { %v1655_v2 = vpop.f32.mrf.mxu1  ;;  %v1835_v12 = vpop.f32.mrf.mxu0 }
 0x301   : > { %v1659_v22 = vadd.f32 %v1655_v2, %v1571_v15 }
 0x302   : > { %v1743_v20 = vpop.f32.mrf.mxu1 }
 0x303   : > { %v1748_v23 = vadd.f32 %v1743_v20, %v1658_v19 }
 0x304   : > { %v1745_v26 = vpop.f32.mrf.mxu1  ;;  %v2007_v28 = vpop.f32.mrf.mxu0 }
 0x305   : > { %v1749_v27 = vadd.f32 %v1745_v26, %v1659_v22  ;;  %v1838_v29 = vadd.f32 %v1833_v10, %v1748_v23 }
 0x306   : > { %v1911_v30 = vpop.f32.mrf.mxu1  ;;  %v2009_v36 = vpop.f32.mrf.mxu0 }
 0x307   : > { %v1839_v33 = vadd.f32 %v1835_v12, %v1749_v27  ;;  %v1916_v34 = vadd.f32 %v1911_v30, %v1838_v29 }
 0x308   : > { %v1913_v37 = vpop.f32.mrf.mxu1  ;;  %v2185_v14 = vpop.f32.mrf.mxu0 }
 0x309   : > { %v1917_v17 = vadd.f32 %v1913_v37, %v1839_v33  ;;  %v2012_v38 = vadd.f32 %v2007_v28, %v1916_v34 }
 0x30a   : > { %v2097_v40 = vpop.f32.mrf.mxu1  ;;  %v2187_v50 = vpop.f32.mrf.mxu0 }
 0x30b   : > { %v2013_v43 = vadd.f32 %v2009_v36, %v1917_v17  ;;  %v2102_v44 = vadd.f32 %v2097_v40, %v2012_v38 }
 0x30c   : > { %v2099_v47 = vpop.f32.mrf.mxu1 }
 0x30d   : > { %v2103_v48 = vadd.f32 %v2099_v47, %v2013_v43  ;;  %v2190_v51 = vadd.f32 %v2185_v14, %v2102_v44 }
 0x30f   : > { %v2191_v52 = vadd.f32 %v2187_v50, %v2103_v48 }
 0x311   : > { %v2275_v32 = vpop.f32.mrf.mxu1 }
 0x312   : > { %v2280_v42 = vadd.f32 %v2275_v32, %v2190_v51 }
 0x313   : > { %v2277_v46 = vpop.f32.mrf.mxu1 }
 0x314   : > { %v2281_v49 = vadd.f32 %v2277_v46, %v2191_v52  ;;  %v2287_v21 = vadd.f32 %v2285_v39, %v2280_v42 }
 0x316   : > { %v2288_v53 = vadd.f32 %v2285_v39, %v2281_v49  ;;  %2568 = vtanh.f32 %v2287_v21 }
 0x318   : > { %2570 = vtanh.f32 %v2288_v53 }
 0x323   : > { %v2569_v56 = vpop.eup %2568 }
 0x324   : > { %v2295_v58 = vmul.f32 %v2569_v56, %v2565_v24 }
 0x325   : > { %v2571_v1 = vpop.eup %2570 }
 0x326   : > { %v2296_v60 = vmul.f32 %v2571_v1, %v2567_v54  ;;  %v2297_v61 = vadd.f32 %v2295_v58, %v2293_v57 }
 0x328   : > { %v2298_v62 = vadd.f32 %v2296_v60, %v2294_v59  ;;  %2299 = vst [vmem:[%s244_s29] sm:$0xff] %v2297_v61 }
 0x32a   : > { %2300 = vst [vmem:[%s244_s29 + $0x8] sm:$0xff] %v2298_v62 }
 0x32b PF: > { %s15_s18 = sadd.s32 1, %s2580_s18  }
 0x32c   : > { %p12_p4 = scmp.ge.s32.totalorder %s15_s18, 4  }
 0x32e   :  { %14 = sbr.rel (!%p12_p4) target bundleno = 1 (0x1), region = 89 }

</bundles_post_ra>
